<compile_context>
chip_gen: v7x
topology: tpu7x:2x2x1
jax: 0.10.0
libtpu: 0.0.40
codegen_flags: <defaults>
</compile_context>

<pallas_src>
import functools

import jax
import jax.numpy as jnp
from jax.experimental import pallas as pl
from jax.experimental.pallas import tpu as pltpu


def _psf_dwconv_kernel(w_ref, x_ref, o_ref, xp_ref, *, k, pad, H, W):
    """Depthwise PSF conv over a block of B independent image planes.

    w_ref : (k, k) float32 PSF taps in SMEM (scalar reads).
    x_ref : (B, H, W) unpadded input block in VMEM.
    o_ref : (B, H, W) output block in VMEM.
    xp_ref: (B, H+2*pad, W+2*pad) float32 VMEM scratch (zero-padded block).
    """
    # In-kernel zero padding: zero the scratch, then write the block into the
    # interior.  Zeroing every step keeps this correct even when the
    # "parallel" grid axis is sharded across TensorCores (megacore), where
    # program_id(0)==0 only runs on one core.
    xp_ref[...] = jnp.zeros_like(xp_ref)
    # Single fp32 cast for the whole block (hoisted out of the k*k tap loop).
    xp_ref[:, pad:pad + H, pad:pad + W] = x_ref[...].astype(jnp.float32)

    xp = xp_ref[...]                      # (B, Hp, Wp) fp32
    B = o_ref.shape[0]
    acc = jnp.zeros((B, H, W), jnp.float32)
    # Hoist the lane-direction (W) shift out of the inner loop: k lane slices
    # total (reused across all sublane/H offsets) instead of k*k.
    for v in range(k):
        x_v = xp[:, :, v:v + W]           # (B, Hp, W), one lane-shift per v
        for u in range(k):
            acc = acc + w_ref[u, v] * x_v[:, u:u + H, :]
    o_ref[...] = acc.astype(o_ref.dtype)


def psf_conv_pallas(hr_image, psf_kernel, *, block_bytes=4 * 1024 * 1024):
    """Replicates psf_conv_generator.forward semantics with a Pallas kernel."""
    k = int(psf_kernel.shape[0])
    # F.conv2d with padding=(k-1)//2 only preserves HxW for odd k (the usual
    # PSF case); even k would shrink the output, so reject it explicitly.
    assert k % 2 == 1, "psf_conv_pallas requires an odd PSF kernel size"
    pad = (k - 1) // 2

    # --- glue: squeeze + reshape logic exactly as in the PyTorch module ---
    x = jnp.squeeze(hr_image)
    if x.ndim == 4:
        n, c, H, W = x.shape
    elif x.ndim == 3:
        c, H, W = x.shape
        n = 1
        x = x.reshape(1, c, H, W)
    else:
        c = 1
        H, W = x.shape
        n = 1
        x = x.reshape(1, 1, H, W)

    nc = n * c
    x_flat = x.reshape(nc, H, W)          # PSF shared per channel -> flatten

    # Choose how many planes to process per grid step:
    #  - fit the input block inside a conservative VMEM byte budget (safe on
    #    v7x's 64 MiB VMEM and well under v5e/v6e's 128 MiB),
    #  - keep >= 2 grid steps when possible so the "parallel" axis can shard
    #    across v7x's two TensorCores.
    img_bytes = H * W * x.dtype.itemsize
    b_img = max(1, block_bytes // max(img_bytes, 1))
    if nc >= 2:
        b_img = min(b_img, pl.cdiv(nc, 2))
    b_img = min(b_img, nc)
    steps = pl.cdiv(nc, b_img)
    nc_pad = steps * b_img
    if nc_pad != nc:
        # Only the tiny plane axis is padded (to make the grid exact); the
        # spatial padding itself is done in-kernel.
        x_flat = jnp.pad(x_flat, ((0, nc_pad - nc), (0, 0), (0, 0)))

    Hp, Wp = H + 2 * pad, W + 2 * pad
    kernel_fn = functools.partial(_psf_dwconv_kernel, k=k, pad=pad, H=H, W=W)

    out_flat = pl.pallas_call(
        kernel_fn,
        out_shape=jax.ShapeDtypeStruct((nc_pad, H, W), x.dtype),
        grid=(steps,),
        in_specs=[
            # PSF taps stay float32 scalars in SMEM (no bf16 truncation).
            pl.BlockSpec(memory_space=pltpu.MemorySpace.SMEM),
            # Unpadded image block; spatial zero-padding happens in-kernel.
            pl.BlockSpec((b_img, H, W), lambda i: (i, 0, 0)),
        ],
        out_specs=pl.BlockSpec((b_img, H, W), lambda i: (i, 0, 0)),
        scratch_shapes=[pltpu.VMEM((b_img, Hp, Wp), jnp.float32)],
        compiler_params=pltpu.CompilerParams(
            dimension_semantics=("parallel",),
            vmem_limit_bytes=48 * 1024 * 1024),
    )(psf_kernel.astype(jnp.float32), x_flat)

    # TODO(synk): for very small W a lane-dense repack (multiple-of-128 last
    # dim) would further cut masked-store overhead; omitted to keep the tap
    # shifts from crossing image boundaries.
    return out_flat[:nc].reshape(n, c, H, W)


def psf_conv_reference(hr_image, psf_kernel):
    """Pure-JAX reference replicating F.conv2d(..., groups=C)."""
    k = psf_kernel.shape[0]
    pad = (k - 1) // 2
    x = jnp.squeeze(hr_image)
    if x.ndim == 3:
        x = x[None]
    elif x.ndim == 2:
        x = x[None, None]
    n, c, H, W = x.shape
    w = jnp.broadcast_to(psf_kernel[None, None], (c, 1, k, k)).astype(x.dtype)
    out = jax.lax.conv_general_dilated(
        x, w, window_strides=(1, 1), padding=[(pad, pad), (pad, pad)],
        dimension_numbers=("NCHW", "OIHW", "NCHW"),
        feature_group_count=c)
    return out


if __name__ == "__main__":
    key = jax.random.PRNGKey(0)
    k_img, _ = jax.random.split(key)

    # Small NCHW input consistent with the module's 4-D branch.
    x = jax.random.normal(k_img, (2, 4, 16, 16), dtype=jnp.float32)

    # Deterministic synthetic PSF (5x5, normalized, Gaussian-ish).
    ksize = 5
    coords = jnp.arange(ksize, dtype=jnp.float32) - (ksize - 1) / 2.0
    g = jnp.exp(-(coords ** 2) / (2.0 * 1.5 ** 2))
    psf = jnp.outer(g, g)
    psf = psf / jnp.sum(psf)

    out = psf_conv_pallas(x, psf)
    out = jax.block_until_ready(out)

    ref = psf_conv_reference(x, psf)
    assert out.shape == ref.shape == (2, 4, 16, 16)
    assert jnp.allclose(out, ref, atol=1e-5, rtol=1e-5)

    print("KERNEL_OK")
</pallas_src>

<mosaic_0001>
module attributes {stable_mosaic.version = 11 : i64} {
  func.func @_psf_dwconv_kernel(%arg0: i32, %arg1: memref<5x5xf32, #tpu.memory_space<smem>>, %arg2: memref<4x16x16xf32, #tpu.memory_space<vmem>>, %arg3: memref<4x16x16xf32, #tpu.memory_space<vmem>>, %arg4: memref<4x20x20xf32, #tpu.memory_space<vmem>>) attributes {dimension_semantics = [#tpu.dimension_semantics<parallel>], iteration_bounds = array<i64: 2>, scalar_prefetch = 0 : i64, scratch_operands = 1 : i64, tpu.core_type = #tpu.core_type<tc>, window_params = [{transform_indices = @transform_0, window_bounds = array<i64: 5, 5>}, {transform_indices = @transform_1, window_bounds = array<i64: 4, 16, 16>}, {transform_indices = @transform_2, window_bounds = array<i64: 4, 16, 16>}]} {
    %cst = arith.constant 0.000000e+00 : f32
    %0 = vector.broadcast %cst : f32 to vector<4x20x20xf32>
    %c0 = arith.constant 0 : index
    %c0_0 = arith.constant 0 : index
    %c0_1 = arith.constant 0 : index
    %1 = vector.load %arg4[%c0, %c0_0, %c0_1] : memref<4x20x20xf32, #tpu.memory_space<vmem>>, vector<4x20x20xf32>
    tpu.vector_store %arg4[%c0, %c0_0, %c0_1], %0 {strides = array<i32>} : memref<4x20x20xf32, #tpu.memory_space<vmem>>, vector<4x20x20xf32>,
    %c0_2 = arith.constant 0 : index
    %c0_3 = arith.constant 0 : index
    %c0_4 = arith.constant 0 : index
    %2 = vector.load %arg2[%c0_2, %c0_3, %c0_4] : memref<4x16x16xf32, #tpu.memory_space<vmem>>, vector<4x16x16xf32>
    %c0_5 = arith.constant 0 : index
    %c2 = arith.constant 2 : index
    %c2_6 = arith.constant 2 : index
    %3 = vector.load %arg4[%c0_5, %c2, %c2_6] : memref<4x20x20xf32, #tpu.memory_space<vmem>>, vector<4x16x16xf32>
    tpu.vector_store %arg4[%c0_5, %c2, %c2_6], %2 {strides = array<i32>} : memref<4x20x20xf32, #tpu.memory_space<vmem>>, vector<4x16x16xf32>,
    %c0_7 = arith.constant 0 : index
    %c0_8 = arith.constant 0 : index
    %c0_9 = arith.constant 0 : index
    %4 = vector.load %arg4[%c0_7, %c0_8, %c0_9] : memref<4x20x20xf32, #tpu.memory_space<vmem>>, vector<4x20x20xf32>
    %cst_10 = arith.constant 0.000000e+00 : f32
    %5 = vector.broadcast %cst_10 : f32 to vector<4x16x16xf32>
    %6 = vector.extract_strided_slice %4 {offsets = [0, 0, 0], sizes = [4, 20, 16], strides = [1, 1, 1]} : vector<4x20x20xf32> to vector<4x20x16xf32>
    %c0_11 = arith.constant 0 : index
    %c0_12 = arith.constant 0 : index
    %7 = memref.load %arg1[%c0_11, %c0_12] : memref<5x5xf32, #tpu.memory_space<smem>>
    %8 = vector.extract_strided_slice %6 {offsets = [0, 0, 0], sizes = [4, 16, 16], strides = [1, 1, 1]} : vector<4x20x16xf32> to vector<4x16x16xf32>
    %9 = vector.broadcast %7 : f32 to vector<4x16x16xf32>
    %10 = arith.mulf %9, %8 : vector<4x16x16xf32>
    %11 = arith.addf %5, %10 : vector<4x16x16xf32>
    %c1 = arith.constant 1 : index
    %c0_13 = arith.constant 0 : index
    %12 = memref.load %arg1[%c1, %c0_13] : memref<5x5xf32, #tpu.memory_space<smem>>
    %13 = vector.extract_strided_slice %6 {offsets = [0, 1, 0], sizes = [4, 16, 16], strides = [1, 1, 1]} : vector<4x20x16xf32> to vector<4x16x16xf32>
    %14 = vector.broadcast %12 : f32 to vector<4x16x16xf32>
    %15 = arith.mulf %14, %13 : vector<4x16x16xf32>
    %16 = arith.addf %11, %15 : vector<4x16x16xf32>
    %c2_14 = arith.constant 2 : index
    %c0_15 = arith.constant 0 : index
    %17 = memref.load %arg1[%c2_14, %c0_15] : memref<5x5xf32, #tpu.memory_space<smem>>
    %18 = vector.extract_strided_slice %6 {offsets = [0, 2, 0], sizes = [4, 16, 16], strides = [1, 1, 1]} : vector<4x20x16xf32> to vector<4x16x16xf32>
    %19 = vector.broadcast %17 : f32 to vector<4x16x16xf32>
    %20 = arith.mulf %19, %18 : vector<4x16x16xf32>
    %21 = arith.addf %16, %20 : vector<4x16x16xf32>
    %c3 = arith.constant 3 : index
    %c0_16 = arith.constant 0 : index
    %22 = memref.load %arg1[%c3, %c0_16] : memref<5x5xf32, #tpu.memory_space<smem>>
    %23 = vector.extract_strided_slice %6 {offsets = [0, 3, 0], sizes = [4, 16, 16], strides = [1, 1, 1]} : vector<4x20x16xf32> to vector<4x16x16xf32>
    %24 = vector.broadcast %22 : f32 to vector<4x16x16xf32>
    %25 = arith.mulf %24, %23 : vector<4x16x16xf32>
    %26 = arith.addf %21, %25 : vector<4x16x16xf32>
    %c4 = arith.constant 4 : index
    %c0_17 = arith.constant 0 : index
    %27 = memref.load %arg1[%c4, %c0_17] : memref<5x5xf32, #tpu.memory_space<smem>>
    %28 = vector.extract_strided_slice %6 {offsets = [0, 4, 0], sizes = [4, 16, 16], strides = [1, 1, 1]} : vector<4x20x16xf32> to vector<4x16x16xf32>
    %29 = vector.broadcast %27 : f32 to vector<4x16x16xf32>
    %30 = arith.mulf %29, %28 : vector<4x16x16xf32>
    %31 = arith.addf %26, %30 : vector<4x16x16xf32>
    %32 = vector.extract_strided_slice %4 {offsets = [0, 0, 1], sizes = [4, 20, 16], strides = [1, 1, 1]} : vector<4x20x20xf32> to vector<4x20x16xf32>
    %c0_18 = arith.constant 0 : index
    %c1_19 = arith.constant 1 : index
    %33 = memref.load %arg1[%c0_18, %c1_19] : memref<5x5xf32, #tpu.memory_space<smem>>
    %34 = vector.extract_strided_slice %32 {offsets = [0, 0, 0], sizes = [4, 16, 16], strides = [1, 1, 1]} : vector<4x20x16xf32> to vector<4x16x16xf32>
    %35 = vector.broadcast %33 : f32 to vector<4x16x16xf32>
    %36 = arith.mulf %35, %34 : vector<4x16x16xf32>
    %37 = arith.addf %31, %36 : vector<4x16x16xf32>
    %c1_20 = arith.constant 1 : index
    %c1_21 = arith.constant 1 : index
    %38 = memref.load %arg1[%c1_20, %c1_21] : memref<5x5xf32, #tpu.memory_space<smem>>
    %39 = vector.extract_strided_slice %32 {offsets = [0, 1, 0], sizes = [4, 16, 16], strides = [1, 1, 1]} : vector<4x20x16xf32> to vector<4x16x16xf32>
    %40 = vector.broadcast %38 : f32 to vector<4x16x16xf32>
    %41 = arith.mulf %40, %39 : vector<4x16x16xf32>
    %42 = arith.addf %37, %41 : vector<4x16x16xf32>
    %c2_22 = arith.constant 2 : index
    %c1_23 = arith.constant 1 : index
    %43 = memref.load %arg1[%c2_22, %c1_23] : memref<5x5xf32, #tpu.memory_space<smem>>
    %44 = vector.extract_strided_slice %32 {offsets = [0, 2, 0], sizes = [4, 16, 16], strides = [1, 1, 1]} : vector<4x20x16xf32> to vector<4x16x16xf32>
    %45 = vector.broadcast %43 : f32 to vector<4x16x16xf32>
    %46 = arith.mulf %45, %44 : vector<4x16x16xf32>
    %47 = arith.addf %42, %46 : vector<4x16x16xf32>
    %c3_24 = arith.constant 3 : index
    %c1_25 = arith.constant 1 : index
    %48 = memref.load %arg1[%c3_24, %c1_25] : memref<5x5xf32, #tpu.memory_space<smem>>
    %49 = vector.extract_strided_slice %32 {offsets = [0, 3, 0], sizes = [4, 16, 16], strides = [1, 1, 1]} : vector<4x20x16xf32> to vector<4x16x16xf32>
    %50 = vector.broadcast %48 : f32 to vector<4x16x16xf32>
    %51 = arith.mulf %50, %49 : vector<4x16x16xf32>
    %52 = arith.addf %47, %51 : vector<4x16x16xf32>
    %c4_26 = arith.constant 4 : index
    %c1_27 = arith.constant 1 : index
    %53 = memref.load %arg1[%c4_26, %c1_27] : memref<5x5xf32, #tpu.memory_space<smem>>
    %54 = vector.extract_strided_slice %32 {offsets = [0, 4, 0], sizes = [4, 16, 16], strides = [1, 1, 1]} : vector<4x20x16xf32> to vector<4x16x16xf32>
    %55 = vector.broadcast %53 : f32 to vector<4x16x16xf32>
    %56 = arith.mulf %55, %54 : vector<4x16x16xf32>
    %57 = arith.addf %52, %56 : vector<4x16x16xf32>
    %58 = vector.extract_strided_slice %4 {offsets = [0, 0, 2], sizes = [4, 20, 16], strides = [1, 1, 1]} : vector<4x20x20xf32> to vector<4x20x16xf32>
    %c0_28 = arith.constant 0 : index
    %c2_29 = arith.constant 2 : index
    %59 = memref.load %arg1[%c0_28, %c2_29] : memref<5x5xf32, #tpu.memory_space<smem>>
    %60 = vector.extract_strided_slice %58 {offsets = [0, 0, 0], sizes = [4, 16, 16], strides = [1, 1, 1]} : vector<4x20x16xf32> to vector<4x16x16xf32>
    %61 = vector.broadcast %59 : f32 to vector<4x16x16xf32>
    %62 = arith.mulf %61, %60 : vector<4x16x16xf32>
    %63 = arith.addf %57, %62 : vector<4x16x16xf32>
    %c1_30 = arith.constant 1 : index
    %c2_31 = arith.constant 2 : index
    %64 = memref.load %arg1[%c1_30, %c2_31] : memref<5x5xf32, #tpu.memory_space<smem>>
    %65 = vector.extract_strided_slice %58 {offsets = [0, 1, 0], sizes = [4, 16, 16], strides = [1, 1, 1]} : vector<4x20x16xf32> to vector<4x16x16xf32>
    %66 = vector.broadcast %64 : f32 to vector<4x16x16xf32>
    %67 = arith.mulf %66, %65 : vector<4x16x16xf32>
    %68 = arith.addf %63, %67 : vector<4x16x16xf32>
    %c2_32 = arith.constant 2 : index
    %c2_33 = arith.constant 2 : index
    %69 = memref.load %arg1[%c2_32, %c2_33] : memref<5x5xf32, #tpu.memory_space<smem>>
    %70 = vector.extract_strided_slice %58 {offsets = [0, 2, 0], sizes = [4, 16, 16], strides = [1, 1, 1]} : vector<4x20x16xf32> to vector<4x16x16xf32>
    %71 = vector.broadcast %69 : f32 to vector<4x16x16xf32>
    %72 = arith.mulf %71, %70 : vector<4x16x16xf32>
    %73 = arith.addf %68, %72 : vector<4x16x16xf32>
    %c3_34 = arith.constant 3 : index
    %c2_35 = arith.constant 2 : index
    %74 = memref.load %arg1[%c3_34, %c2_35] : memref<5x5xf32, #tpu.memory_space<smem>>
    %75 = vector.extract_strided_slice %58 {offsets = [0, 3, 0], sizes = [4, 16, 16], strides = [1, 1, 1]} : vector<4x20x16xf32> to vector<4x16x16xf32>
    %76 = vector.broadcast %74 : f32 to vector<4x16x16xf32>
    %77 = arith.mulf %76, %75 : vector<4x16x16xf32>
    %78 = arith.addf %73, %77 : vector<4x16x16xf32>
    %c4_36 = arith.constant 4 : index
    %c2_37 = arith.constant 2 : index
    %79 = memref.load %arg1[%c4_36, %c2_37] : memref<5x5xf32, #tpu.memory_space<smem>>
    %80 = vector.extract_strided_slice %58 {offsets = [0, 4, 0], sizes = [4, 16, 16], strides = [1, 1, 1]} : vector<4x20x16xf32> to vector<4x16x16xf32>
    %81 = vector.broadcast %79 : f32 to vector<4x16x16xf32>
    %82 = arith.mulf %81, %80 : vector<4x16x16xf32>
    %83 = arith.addf %78, %82 : vector<4x16x16xf32>
    %84 = vector.extract_strided_slice %4 {offsets = [0, 0, 3], sizes = [4, 20, 16], strides = [1, 1, 1]} : vector<4x20x20xf32> to vector<4x20x16xf32>
    %c0_38 = arith.constant 0 : index
    %c3_39 = arith.constant 3 : index
    %85 = memref.load %arg1[%c0_38, %c3_39] : memref<5x5xf32, #tpu.memory_space<smem>>
    %86 = vector.extract_strided_slice %84 {offsets = [0, 0, 0], sizes = [4, 16, 16], strides = [1, 1, 1]} : vector<4x20x16xf32> to vector<4x16x16xf32>
    %87 = vector.broadcast %85 : f32 to vector<4x16x16xf32>
    %88 = arith.mulf %87, %86 : vector<4x16x16xf32>
    %89 = arith.addf %83, %88 : vector<4x16x16xf32>
    %c1_40 = arith.constant 1 : index
    %c3_41 = arith.constant 3 : index
    %90 = memref.load %arg1[%c1_40, %c3_41] : memref<5x5xf32, #tpu.memory_space<smem>>
    %91 = vector.extract_strided_slice %84 {offsets = [0, 1, 0], sizes = [4, 16, 16], strides = [1, 1, 1]} : vector<4x20x16xf32> to vector<4x16x16xf32>
    %92 = vector.broadcast %90 : f32 to vector<4x16x16xf32>
    %93 = arith.mulf %92, %91 : vector<4x16x16xf32>
    %94 = arith.addf %89, %93 : vector<4x16x16xf32>
    %c2_42 = arith.constant 2 : index
    %c3_43 = arith.constant 3 : index
    %95 = memref.load %arg1[%c2_42, %c3_43] : memref<5x5xf32, #tpu.memory_space<smem>>
    %96 = vector.extract_strided_slice %84 {offsets = [0, 2, 0], sizes = [4, 16, 16], strides = [1, 1, 1]} : vector<4x20x16xf32> to vector<4x16x16xf32>
    %97 = vector.broadcast %95 : f32 to vector<4x16x16xf32>
    %98 = arith.mulf %97, %96 : vector<4x16x16xf32>
    %99 = arith.addf %94, %98 : vector<4x16x16xf32>
    %c3_44 = arith.constant 3 : index
    %c3_45 = arith.constant 3 : index
    %100 = memref.load %arg1[%c3_44, %c3_45] : memref<5x5xf32, #tpu.memory_space<smem>>
    %101 = vector.extract_strided_slice %84 {offsets = [0, 3, 0], sizes = [4, 16, 16], strides = [1, 1, 1]} : vector<4x20x16xf32> to vector<4x16x16xf32>
    %102 = vector.broadcast %100 : f32 to vector<4x16x16xf32>
    %103 = arith.mulf %102, %101 : vector<4x16x16xf32>
    %104 = arith.addf %99, %103 : vector<4x16x16xf32>
    %c4_46 = arith.constant 4 : index
    %c3_47 = arith.constant 3 : index
    %105 = memref.load %arg1[%c4_46, %c3_47] : memref<5x5xf32, #tpu.memory_space<smem>>
    %106 = vector.extract_strided_slice %84 {offsets = [0, 4, 0], sizes = [4, 16, 16], strides = [1, 1, 1]} : vector<4x20x16xf32> to vector<4x16x16xf32>
    %107 = vector.broadcast %105 : f32 to vector<4x16x16xf32>
    %108 = arith.mulf %107, %106 : vector<4x16x16xf32>
    %109 = arith.addf %104, %108 : vector<4x16x16xf32>
    %110 = vector.extract_strided_slice %4 {offsets = [0, 0, 4], sizes = [4, 20, 16], strides = [1, 1, 1]} : vector<4x20x20xf32> to vector<4x20x16xf32>
    %c0_48 = arith.constant 0 : index
    %c4_49 = arith.constant 4 : index
    %111 = memref.load %arg1[%c0_48, %c4_49] : memref<5x5xf32, #tpu.memory_space<smem>>
    %112 = vector.extract_strided_slice %110 {offsets = [0, 0, 0], sizes = [4, 16, 16], strides = [1, 1, 1]} : vector<4x20x16xf32> to vector<4x16x16xf32>
    %113 = vector.broadcast %111 : f32 to vector<4x16x16xf32>
    %114 = arith.mulf %113, %112 : vector<4x16x16xf32>
    %115 = arith.addf %109, %114 : vector<4x16x16xf32>
    %c1_50 = arith.constant 1 : index
    %c4_51 = arith.constant 4 : index
    %116 = memref.load %arg1[%c1_50, %c4_51] : memref<5x5xf32, #tpu.memory_space<smem>>
    %117 = vector.extract_strided_slice %110 {offsets = [0, 1, 0], sizes = [4, 16, 16], strides = [1, 1, 1]} : vector<4x20x16xf32> to vector<4x16x16xf32>
    %118 = vector.broadcast %116 : f32 to vector<4x16x16xf32>
    %119 = arith.mulf %118, %117 : vector<4x16x16xf32>
    %120 = arith.addf %115, %119 : vector<4x16x16xf32>
    %c2_52 = arith.constant 2 : index
    %c4_53 = arith.constant 4 : index
    %121 = memref.load %arg1[%c2_52, %c4_53] : memref<5x5xf32, #tpu.memory_space<smem>>
    %122 = vector.extract_strided_slice %110 {offsets = [0, 2, 0], sizes = [4, 16, 16], strides = [1, 1, 1]} : vector<4x20x16xf32> to vector<4x16x16xf32>
    %123 = vector.broadcast %121 : f32 to vector<4x16x16xf32>
    %124 = arith.mulf %123, %122 : vector<4x16x16xf32>
    %125 = arith.addf %120, %124 : vector<4x16x16xf32>
    %c3_54 = arith.constant 3 : index
    %c4_55 = arith.constant 4 : index
    %126 = memref.load %arg1[%c3_54, %c4_55] : memref<5x5xf32, #tpu.memory_space<smem>>
    %127 = vector.extract_strided_slice %110 {offsets = [0, 3, 0], sizes = [4, 16, 16], strides = [1, 1, 1]} : vector<4x20x16xf32> to vector<4x16x16xf32>
    %128 = vector.broadcast %126 : f32 to vector<4x16x16xf32>
    %129 = arith.mulf %128, %127 : vector<4x16x16xf32>
    %130 = arith.addf %125, %129 : vector<4x16x16xf32>
    %c4_56 = arith.constant 4 : index
    %c4_57 = arith.constant 4 : index
    %131 = memref.load %arg1[%c4_56, %c4_57] : memref<5x5xf32, #tpu.memory_space<smem>>
    %132 = vector.extract_strided_slice %110 {offsets = [0, 4, 0], sizes = [4, 16, 16], strides = [1, 1, 1]} : vector<4x20x16xf32> to vector<4x16x16xf32>
    %133 = vector.broadcast %131 : f32 to vector<4x16x16xf32>
    %134 = arith.mulf %133, %132 : vector<4x16x16xf32>
    %135 = arith.addf %130, %134 : vector<4x16x16xf32>
    %c0_58 = arith.constant 0 : index
    %c0_59 = arith.constant 0 : index
    %c0_60 = arith.constant 0 : index
    %136 = vector.load %arg3[%c0_58, %c0_59, %c0_60] : memref<4x16x16xf32, #tpu.memory_space<vmem>>, vector<4x16x16xf32>
    tpu.vector_store %arg3[%c0_58, %c0_59, %c0_60], %135 {strides = array<i32>} : memref<4x16x16xf32, #tpu.memory_space<vmem>>, vector<4x16x16xf32>,
    return
  }
  func.func @transform_0(%arg0: i32) -> (i32, i32) {
    %c0_i32 = arith.constant 0 : i32
    %c0_i32_0 = arith.constant 0 : i32
    %c0_i32_1 = arith.constant 0 : i32
    return %c0_i32, %c0_i32_0 : i32, i32
  }
  func.func @transform_1(%arg0: i32) -> (i32, i32, i32) {
    %c0_i32 = arith.constant 0 : i32
    %c0_i32_0 = arith.constant 0 : i32
    %c0_i32_1 = arith.constant 0 : i32
    return %arg0, %c0_i32, %c0_i32_0 : i32, i32, i32
  }
  func.func @transform_2(%arg0: i32) -> (i32, i32, i32) {
    %c0_i32 = arith.constant 0 : i32
    %c0_i32_0 = arith.constant 0 : i32
    %c0_i32_1 = arith.constant 0 : i32
    return %arg0, %c0_i32, %c0_i32_0 : i32, i32, i32
  }
}

</mosaic_0001>

<bundles_post_ra>
// kernel: tpu_custom_call.1
= control target key start
LH: loop header
LB: loop body
LE: loop exit
PB: predicated region body
PF: predicated region fallthrough
CT: control target
= control target key end

     0   :  { %7 = vsyncpa [#allocation6], 0  ;;  %s3829_s0 = inlined_call_operand.hbm [shape: f32[5,5], index: 0, kind: input, shape index: {}]   ;;  %s3830_s1 = inlined_call_operand.hbm [shape: f32[8,16,16], index: 1, kind: input, shape index: {}]   ;;  %s3831_s2 = inlined_call_operand.hbm [shape: f32[8,16,16], index: 2, kind: output, shape index: {}]  }
   0x1   :  { %8 = vsyncpa [#allocation4], 0 }
   0x2   :  { %10 = vsyncpa [#allocation4 + $0x1], 0 }
   0x3   :  { %11 = vsyncpa [#allocation5], 0 }
   0x4   :  { %13 = vsyncpa [#allocation5 + $0x1], 0  ;;  %s2355_s9 = smov 0   ;;  %s2357_s10 = smov 0  }
   0x5   :  { %s2359_s11 = smov 0   ;;  %s2361_s12 = smov 0  }
   0x6 LB: > { %s2376_s13 = sadd.s32 4294967295, %s2325_s12   ;;  %s2079_s14 = sadd.s32 4294967294, %s2325_s12   ;;  %s2325_s12 = sphi %s2361_s12, %s3978_s12   ;;  %s2321_s11 = sphi %s2359_s11, %s3977_s11   ;;  %s2317_s10 = sphi %s2357_s10, %s3976_s10   ;;  %s2313_s9 = sphi %s2355_s9, %s3975_s9  }
   0x7   : > { %s2380_s15 = sadd.s32 1, %s2325_s12   ;;  %s47_s16 = sadd.s32 1, %s2321_s11 }
   0x8   : > { %s44_s17 = ssub.s32 %s2325_s12, %s2380_s15  ;;  %p54_p0 = scmp.ne.s32.totalorder %s2321_s11, %s2317_s10 }
   0x9   : > { %p45_p1 = scmp.eq.s32.totalorder %s44_s17, 0  ;;  %p55_p2 = scmp.eq.s32.totalorder %s2325_s12, 0 }
   0xa   : > { %p60_p3 = scmp.ne.s32.totalorder %s2317_s10, %s2313_s9  ;;  %p3832_p4 = scmp.eq.s32.totalorder %s2376_s13, 0 }
   0xb   : > { %s2392_s18 = scalar_select %p45_p1, %s2321_s11, %s47_s16  }
   0xc   : > { %p2394_p5 = por %p55_p2, %p54_p0  ;;  %p2400_p6 = por %p3832_p4, %p60_p3 }
   0xd   : > { %p84_p7 = scmp.eq.s32.totalorder %s2376_s13, 1  ;;  %p90_p8 = scmp.eq.s32.totalorder %s2079_s14, 1 }
   0xe   : > { %s3842_s20 = scalar_select %p2400_p6, 1, 0 }
   0xf   : > { %p2080_p9 = scmp.ge.s32.totalorder %s2325_s12, 1  ;;  %p97_p10 = scmp.lt.s32.totalorder %s2325_s12, 3 }
  0x10   : > { %p2407_p11 = por %p84_p7, %p54_p0  ;;  %p2411_p12 = por %p90_p8, %p60_p3 }
  0x11   : > { %p2415_p13 = pnand %p2080_p9, %p97_p10  ;;  %p2146_p4 = scmp.lt.s32.totalorder %s2325_s12, 2 }
  0x12   : > { %s3843_s21 = scalar_select %p2407_p11, 1, 0 }
  0x13   : > { %s3844_s22 = scalar_select %p2411_p12, 1, 0 }
  0x14   : > { %p2133_p2 = pneg %p2415_p13  ;;  %s119_s24 = sand.u32 1, %s2321_s11  }
  0x15   : > { %s2122_s25 = sshll.u32 %s2325_s12, 10  ;;  %p3846_p6 = scmp.eq.s32.totalorder %s2376_s13, 0 }
  0x16   : > { %p2429_p7 = pnand %p2146_p4, %p2394_p5  ;;  %s2083_s27 = sshll.u32 %s119_s24, 6 }
  0x17   : > { %p2134_p0 = pnand %p2133_p2, %p3846_p6  ;;  %s2212_s30 = scalar_lea.hbm %s3829_s0, 128 }
  0x18   : > { %p2213_p3 = scmp.ne.s32.totalorder %s3829_s0, %s2212_s30  ;;  %p2219_p6 = scmp.lt.u32.totalorder %s2212_s30, %s3829_s0 }
  0x19   : > { %p2214_p8 = pneg %p2134_p0 }
  0x1b   : > { %p2215_p9 = pnand %p2214_p8, %p2213_p3 }
  0x1d   : > { %p2216_p10 = pneg %p2215_p9 }
  0x1f   : > { %p2221_p4 = pnand %p2219_p6, %p2216_p10 }
  0x21   : > { %2224 = shalt.err (!%p2221_p4)
}
  0x22   : > { %s2327_s7 = smov [#allocation3]   ;;  %s2448_s19 = scalar_lea.hbm %s3830_s1, %s2122_s25 }
  0x23   : > { %2136 = dma.hbm_to_smem (!%p2134_p0), %s3829_s0, 128, %s2327_s7, [#allocation6]  }
  0x24   : > { %s123_s28 = scalar_lea.vmem [#allocation7], %s2083_s27  ;;  %s2452_s30 = scalar_lea.sflag [#allocation4], %s119_s24 }
  0x25   : > { %s131_s29 = sshll.u32 %s123_s28, 4  ;;  %s2225_s3 = scalar_lea.hbm %s2448_s19, 1024  ;;  %s2450_s29 = int_to_ptr.vmem [resolvable:$true] %s131_s29 }
  0x26   : > { %p2226_p5 = scmp.ne.s32.totalorder %s2448_s19, %s2225_s3  ;;  %p2227_p2 = pneg %p2429_p7 }
  0x27   : > { %s2230_s5 = scalar_lea.hbm %s3830_s1, 2048  ;;  %p2231_p8 = scmp.lt.u32.totalorder %s2448_s19, %s3830_s1 }
  0x28   : > { %p2228_p0 = pnand %p2227_p2, %p2226_p5  ;;  %p2232_p9 = scmp.lt.u32.totalorder %s2230_s5, %s2225_s3 }
  0x29   : > { %p2234_p6 = scmp.lt.u32.totalorder %s2225_s3, %s2448_s19 }
  0x2a   : > { %p2229_p3 = pneg %p2228_p0  ;;  %p2233_p10 = por %p2232_p9, %p2231_p8 }
  0x2c   : > { %p2235_p4 = por %p2234_p6, %p2233_p10 }
  0x2e   : > { %p2236_p1 = pnand %p2235_p4, %p2229_p3 }
  0x30   : > { %2239 = shalt.err (!%p2236_p1)
}
  0x31   : > { %s2240_s24 = scalar_lea.vmem %s2450_s29, 1024  ;;  %s2328_s27 = smov [#allocation7]  }
  0x32   : > { %p2241_p5 = scmp.ne.s32.totalorder %s2450_s29, %s2240_s24  ;;  %s2245_s8 = sshll.u32 %s2328_s27, 4  ;;  %s2246_s8 = int_to_ptr.vmem [resolvable:$false] %s2245_s8 }
  0x33   : > { %s2247_s14 = scalar_lea.vmem %s2246_s8, 2048  ;;  %p2248_p11 = scmp.lt.s32.totalorder %s2450_s29, %s2246_s8 }
  0x34   : > { %p2243_p0 = pnand %p2241_p5, %p2227_p2  ;;  %p2249_p8 = scmp.lt.s32.totalorder %s2247_s14, %s2240_s24 }
  0x36   : > { %p2244_p12 = pneg %p2243_p0  ;;  %p2250_p9 = por %p2249_p8, %p2248_p11 }
  0x38   : > { %p2251_p10 = pnand %p2250_p9, %p2244_p12 }
  0x3a   : > { %2254 = shalt.err (!%p2251_p10)
}
  0x3b   : > { %s2329_s16 = smov 128   ;;  %s2330_s17 = smov 8  }
  0x3c   : > { %2140 = dma.hbm_to_vmem [thread:$0]  (!%p2429_p7), %s2448_s19, 1024, %s2450_s29, %s2452_s30, %s2329_s16, %s2329_s16, %s2330_s17  }
  0x3d   : > { %143 = sbr.rel (%p2415_p13) target bundleno = 655 (0x28f), region = 28 }
  0x44   : > { %p3848_p1 = scmp.eq.s32.totalorder %s2376_s13, 0 }
  0x46   : > { %2300 = dma.done.wait (%p3848_p1), [#allocation6], 128   ;;  %p3849_p2 = pmov %p3848_p1 }
  0x47   : > { %s2487_s28 = sand.u32 1, %s2317_s10   ;;  %p3850_p11 = scmp.ne.s32.totalorder %s3842_s20, 0 }
  0x48   : > { %2302 = vsyncadd (%p3849_p2), [#allocation6], 4294967168  ;;  %s2089_s3 = sshll.u32 %s2487_s28, 6  ;;  %s150_s25 = scalar_lea.sflag [#allocation4], %s2487_s28 }
  0x49   : > { %s2493_s26 = scalar_lea.vmem [#allocation7], %s2089_s3 }
  0x4a   : > { %2304 = dma.done.wait (%p3850_p11), %s150_s25, 1024  }
  0x4b   : > { %2306 = vsyncadd (%p3850_p11), %s150_s25, 4294966272 }
  0x4c   : > { %158 = sfence }
  0x4d   : > { %v193_v0 = vld [vmem:[%s2493_s26 + $0x10] sm:$0xff]  ;;  %v191_v1 = vld [vmem:[%s2493_s26] sm:$0xff]  ;;  %vm177_vm0 = vcmask 162816   ;;  %s2331_s23 = smov 2   ;;  %vm180_vm1 = vcmask 158720   ;;  %v194_v2 = vld [vmem:[%s2493_s26 + $0x18] sm:$0xff] }
  0x4e   : > { %211 = vrot.lane.b32.xlu1 %v193_v0, %s2331_s23  ;;  %207 = vrot.lane.b32.xlu0 %v191_v1, %s2331_s23  ;;  %v192_v3 = vld [vmem:[%s2493_s26 + $0x8] sm:$0xff]  ;;  %v2332_v4 = vmov 0.0   ;;  %v195_v6 = vld [vmem:[%s2493_s26 + $0x20] sm:$0xff]  ;;  %vm231_vm2 = vcmask 146448   ;;  %s2095_s20 = sld [smem:[#allocation3 + $0x1]]  ;;  %s2333_s19 = smov 127  }
  0x4f   : > { %182 = vst.msk [vmem:[#allocation2 + $0x18] sm:$0xff] %vm177_vm0, %v2332_v4  ;;  %183 = vst.msk [vmem:[#allocation2 + $0x20] sm:$0xff] %vm177_vm0, %v2332_v4  ;;  %v196_v5 = vld [vmem:[%s2493_s26 + $0x28] sm:$0xff]  ;;  %v198_v7 = vld [vmem:[%s2493_s26 + $0x38] sm:$0xff]  ;;  %s2100_s29 = sld [smem:[#allocation3 + $0x2]]  ;;  %s2096_s30 = sld [smem:[#allocation3 + $0x81]] }
  0x50   : > { %178 = vst.msk [vmem:[#allocation2] sm:$0xff] %vm177_vm0, %v2332_v4  ;;  %179 = vst.msk [vmem:[#allocation2 + $0x8] sm:$0xff] %vm177_vm0, %v2332_v4  ;;  %v197_v8 = vld [vmem:[%s2493_s26 + $0x30] sm:$0xff]  ;;  %s2334_s4 = smov 126   ;;  %vm296_vm3 = vcmask 1046528   ;;  %s2097_s5 = sld [smem:[#allocation3 + $0x101]] }
  0x51   : > { %185 = vst.msk [vmem:[#allocation2 + $0x30] sm:$0xff] %vm177_vm0, %v2332_v4  ;;  %186 = vst.msk [vmem:[#allocation2 + $0x38] sm:$0xff] %vm177_vm0, %v2332_v4  ;;  %vm359_vm4 = vcmask 1045504   ;;  %s2098_s6 = sld [smem:[#allocation3 + $0x181]]  ;;  %vm422_vm5 = vcmask 1044480   ;;  %vm485_vm6 = vcmask 1043456  }
  0x52   : > { %188 = vst.msk [vmem:[#allocation2 + $0x48] sm:$0xff] %vm177_vm0, %v2332_v4  ;;  %189 = vst.msk [vmem:[#allocation2 + $0x50] sm:$0xff] %vm177_vm0, %v2332_v4  ;;  %213 = vrot.lane.b32.xlu1 %v194_v2, %s2331_s23  ;;  %209 = vrot.lane.b32.xlu0 %v192_v3, %s2331_s23  ;;  %s2099_s7 = sld [smem:[#allocation3 + $0x201]]  ;;  %s2101_s24 = sld [smem:[#allocation3 + $0x82]]  ;;  %vm1970_vm7 = vcmask 130048  }
  0x53   : > { %184 = vst.msk [vmem:[#allocation2 + $0x28] sm:$0xf] %vm180_vm1, %v2332_v4  ;;  %181 = vst.msk [vmem:[#allocation2 + $0x10] sm:$0xf] %vm180_vm1, %v2332_v4  ;;  %s2102_s27 = sld [smem:[#allocation3 + $0x102]]  ;;  %s2091_s16 = sld [smem:[#allocation3 + $0x80]] }
  0x54   : > { %187 = vst.msk [vmem:[#allocation2 + $0x40] sm:$0xf] %vm180_vm1, %v2332_v4  ;;  %190 = vst.msk [vmem:[#allocation2 + $0x58] sm:$0xf] %vm180_vm1, %v2332_v4  ;;  %v523_v13 = vstv %s2095_s20  ;;  %s2103_s8 = sld [smem:[#allocation3 + $0x182]]  ;;  %s2105_s17 = sld [smem:[#allocation3 + $0x3]] }
  0x55   : > { %v885_v33 = vstv %s2100_s29  ;;  %v573_v40 = vstv %s2096_s30  ;;  %s2104_s14 = sld [smem:[#allocation3 + $0x202]]  ;;  %s252_s25 = sld [smem:[#allocation3]] }
  0x56   : > { %217 = vrot.lane.b32.xlu1 %v196_v5, %s2331_s23  ;;  %215 = vrot.lane.b32.xlu0 %v195_v6, %s2331_s23  ;;  %v651_v5 = vstv %s2097_s5  ;;  %s2092_s26 = sld [smem:[#allocation3 + $0x100]]  ;;  %s2866_s29 = sld [smem:[#allocation3 + $0x103]] }
  0x57   : > { %s2094_s20 = sld [smem:[#allocation3 + $0x200]]  ;;  %s2335_s30 = smov 125  }
  0x58   : > { %s2996_s5 = sld [smem:[#allocation3 + $0x203]]  ;;  %p3972_p13 = scmp.ne.s32.totalorder %s3843_s21, 0 }
  0x5a   : > { %221 = vrot.lane.b32.xlu1 %v198_v7, %s2331_s23  ;;  %219 = vrot.lane.b32.xlu0 %v197_v8, %s2331_s23  ;;  %s2093_s23 = sld [smem:[#allocation3 + $0x180]] }
  0xc0   : > { %v212_v9 = vpop.permute.xlu1 %211  ;;  %v208_v10 = vpop.permute.xlu0 %207 }
  0xc1   : > { %234 = vst.msk [vmem:[#allocation2 + $0x1a] sm:$0xff] %vm231_vm2, %v212_v9  ;;  %232 = vst.msk [vmem:[#allocation2 + $0x2] sm:$0xff] %vm231_vm2, %v208_v10 }
  0xc4   : > { %v214_v11 = vpop.permute.xlu1 %213  ;;  %v210_v12 = vpop.permute.xlu0 %209 }
  0xc5   : > { %235 = vst.msk [vmem:[#allocation2 + $0x22] sm:$0xff] %vm231_vm2, %v214_v11  ;;  %233 = vst.msk [vmem:[#allocation2 + $0xa] sm:$0xff] %vm231_vm2, %v210_v12 }
  0xc8   : > { %v2511_v14 = vld [vmem:[#allocation2 + $0x18] sm:$0xff]  ;;  %v2513_v15 = vld [vmem:[#allocation2] sm:$0xff]  ;;  %v218_v16 = vpop.permute.xlu1 %217  ;;  %v216_v17 = vpop.permute.xlu0 %215 }
  0xc9   : > { %237 = vst.msk [vmem:[#allocation2 + $0x3a] sm:$0xff] %vm231_vm2, %v218_v16  ;;  %236 = vst.msk [vmem:[#allocation2 + $0x32] sm:$0xff] %vm231_vm2, %v216_v17  ;;  %v524_v18 = vmul.f32 %v523_v13, %v2513_v15  ;;  %v526_v19 = vmul.f32 %v523_v13, %v2511_v14  ;;  %v886_v35 = vmul.f32 %v885_v33, %v2513_v15 }
  0xca   : > { %v888_v37 = vmul.f32 %v885_v33, %v2511_v14  ;;  %v574_v43 = vmul.f32 %v573_v40, %v2513_v15  ;;  %v577_v44 = vmul.f32 %v573_v40, %v2511_v14  ;;  %v652_v16 = vmul.f32 %v651_v5, %v2513_v15 }
  0xcb   : > { %540 = vrot.lane.b32.xlu0 %v524_v18, %s2333_s19  ;;  %v655_v18 = vmul.f32 %v651_v5, %v2511_v14 }
  0xcc   : > { %v2520_v20 = vld [vmem:[#allocation2 + $0x8] sm:$0xff]  ;;  %v222_v21 = vpop.permute.xlu1 %221  ;;  %v220_v22 = vpop.permute.xlu0 %219  ;;  %v2525_v24 = vld [vmem:[#allocation2 + $0x20] sm:$0xff]  ;;  %v2555_v41 = vld [vmem:[#allocation2 + $0x10] sm:$0xf]  ;;  %v598_v51 = vrot.slane %v574_v43, 1  ;;  %v603_v52 = vrot.slane %v577_v44, 1 }
  0xcd   : > { %239 = vst.msk [vmem:[#allocation2 + $0x52] sm:$0xff] %vm231_vm2, %v222_v21  ;;  %238 = vst.msk [vmem:[#allocation2 + $0x4a] sm:$0xff] %vm231_vm2, %v220_v22  ;;  %v525_v23 = vmul.f32 %v523_v13, %v2520_v20  ;;  %v527_v26 = vmul.f32 %v523_v13, %v2525_v24  ;;  %v887_v36 = vmul.f32 %v885_v33, %v2520_v20  ;;  %v2566_v49 = vld [vmem:[#allocation2 + $0x28] sm:$0xf] }
  0xce   : > { %v889_v38 = vmul.f32 %v885_v33, %v2525_v24  ;;  %v575_v42 = vmul.f32 %v573_v40, %v2520_v20  ;;  %v576_v47 = vmul.f32 %v573_v40, %v2555_v41  ;;  %v578_v48 = vmul.f32 %v573_v40, %v2525_v24 }
  0xcf   : > { %542 = vrot.lane.b32.xlu1 %v525_v23, %s2333_s19  ;;  %544 = vrot.lane.b32.xlu0 %v526_v19, %s2333_s19  ;;  %v579_v56 = vmul.f32 %v573_v40, %v2566_v49  ;;  %v653_v9 = vmul.f32 %v651_v5, %v2520_v20  ;;  %v654_v17 = vmul.f32 %v651_v5, %v2555_v41 }
  0xd0   : > { %v2529_v25 = vld [vmem:[#allocation2 + $0x30] sm:$0xff]  ;;  %v2533_v28 = vld [vmem:[#allocation2 + $0x38] sm:$0xff]  ;;  %v599_v50 = vrot.slane %v575_v42, 1  ;;  %v601_v54 = vrot.slane %v576_v47, 1  ;;  %v604_v55 = vrot.slane %v578_v48, 1  ;;  %v656_v19 = vmul.f32 %v651_v5, %v2525_v24 }
  0xd1   : > { %v528_v27 = vmul.f32 %v523_v13, %v2529_v25  ;;  %v529_v29 = vmul.f32 %v523_v13, %v2533_v28  ;;  %v890_v39 = vmul.f32 %v885_v33, %v2529_v25  ;;  %v891_v45 = vmul.f32 %v885_v33, %v2533_v28  ;;  %v2577_v60 = vld [vmem:[#allocation2 + $0x40] sm:$0xf] }
  0xd2   : > { %v600_v57 = vsel %vm296_vm3, %v598_v51, %v599_v50  ;;  %v580_v58 = vmul.f32 %v573_v40, %v2529_v25  ;;  %v581_v59 = vmul.f32 %v573_v40, %v2533_v28  ;;  %v602_v61 = vsel %vm296_vm3, %v599_v50, %v601_v54 }
  0xd3   : > { %546 = vrot.lane.b32.xlu1 %v527_v26, %s2333_s19  ;;  %548 = vrot.lane.b32.xlu0 %v528_v27, %s2333_s19  ;;  %v605_v62 = vsel %vm296_vm3, %v603_v52, %v604_v55  ;;  %v606_v63 = vrot.slane %v579_v56, 1  ;;  %v582_v0 = vmul.f32 %v573_v40, %v2577_v60  ;;  %v677_v26 = vrot.slane %v653_v9, 2 }
  0xd4   : > { %v2538_v30 = vld [vmem:[#allocation2 + $0x48] sm:$0xff]  ;;  %v2541_v32 = vld [vmem:[#allocation2 + $0x50] sm:$0xff]  ;;  %v608_v1 = vrot.slane %v580_v58, 1  ;;  %v609_v2 = vrot.slane %v581_v59, 1  ;;  %v2586_v6 = vld [vmem:[#allocation2 + $0x58] sm:$0xf]  ;;  %v660_v43 = vmul.f32 %v651_v5, %v2577_v60  ;;  %v729_v48 = vstv %s2098_s6 }
  0xd5   : > { %v530_v31 = vmul.f32 %v523_v13, %v2538_v30  ;;  %v531_v34 = vmul.f32 %v523_v13, %v2541_v32  ;;  %v892_v46 = vmul.f32 %v885_v33, %v2538_v30  ;;  %v893_v53 = vmul.f32 %v885_v33, %v2541_v32  ;;  %s3370_s6 = sld [smem:[#allocation3 + $0x4]] }
  0xd6   : > { %v583_v3 = vmul.f32 %v573_v40, %v2538_v30  ;;  %v584_v4 = vmul.f32 %v573_v40, %v2541_v32  ;;  %v607_v7 = vsel %vm296_vm3, %v604_v55, %v606_v63  ;;  %v611_v8 = vrot.slane %v582_v0, 1 }
  0xd7   : > { %550 = vrot.lane.b32.xlu1 %v529_v29, %s2333_s19  ;;  %552 = vrot.lane.b32.xlu0 %v530_v31, %s2333_s19  ;;  %v610_v10 = vsel %vm296_vm3, %v608_v1, %v609_v2  ;;  %v585_v13 = vmul.f32 %v573_v40, %v2586_v6  ;;  %v676_v27 = vrot.slane %v652_v16, 2  ;;  %v679_v29 = vrot.slane %v654_v17, 2 }
  0xd8   : > { %v613_v11 = vrot.slane %v583_v3, 1  ;;  %v614_v12 = vrot.slane %v584_v4, 1  ;;  %v612_v21 = vsel %vm296_vm3, %v609_v2, %v611_v8  ;;  %v681_v31 = vrot.slane %v655_v18, 2 }
  0xd9   : > { %v616_v23 = vrot.slane %v585_v13, 1  ;;  %v682_v33 = vrot.slane %v656_v19, 2  ;;  %v662_v47 = vmul.f32 %v651_v5, %v2541_v32  ;;  %v689_v51 = vrot.slane %v660_v43, 2 }
  0xda   : > { %v615_v22 = vsel %vm296_vm3, %v613_v11, %v614_v12  ;;  %v731_v52 = vmul.f32 %v729_v48, %v2520_v20  ;;  %v663_v56 = vmul.f32 %v651_v5, %v2586_v6  ;;  %v732_v58 = vmul.f32 %v729_v48, %v2555_v41 }
  0xdb   : > { %554 = vrot.lane.b32.xlu1 %v531_v34, %s2333_s19  ;;  %902 = vrot.lane.b32.xlu0 %v886_v35, %s2334_s4  ;;  %v657_v34 = vmul.f32 %v651_v5, %v2566_v49  ;;  %v617_v35 = vsel %vm296_vm3, %v614_v12, %v616_v23  ;;  %v683_v40 = vsel %vm359_vm4, %v681_v31, %v682_v33  ;;  %v692_v55 = vrot.slane %v662_v47, 2 }
  0xdc   : > { %v733_v59 = vmul.f32 %v729_v48, %v2511_v14  ;;  %v694_v0 = vrot.slane %v663_v56, 2  ;;  %v755_v1 = vrot.slane %v731_v52, 3  ;;  %v757_v3 = vrot.slane %v732_v58, 3 }
  0xdd   : > { %v684_v42 = vrot.slane %v657_v34, 2  ;;  %v737_v11 = vmul.f32 %v729_v48, %v2533_v28  ;;  %v738_v17 = vmul.f32 %v729_v48, %v2577_v60 }
  0xde   : > { %v759_v4 = vrot.slane %v733_v59, 3  ;;  %v695_v8 = vsel %vm359_vm4, %v692_v55, %v694_v0  ;;  %v758_v12 = vsel %vm422_vm5, %v755_v1, %v757_v3  ;;  %v935_v3 = vstv %s2101_s24  ;;  %s3419_s24 = sld [smem:[#allocation3 + $0x104]] }
  0xdf   : > { %904 = vrot.lane.b32.xlu1 %v887_v36, %s2334_s4  ;;  %906 = vrot.lane.b32.xlu0 %v888_v37, %s2334_s4  ;;  %v678_v36 = vsel %vm359_vm4, %v676_v27, %v677_v26  ;;  %v658_v37 = vmul.f32 %v651_v5, %v2529_v25  ;;  %v685_v50 = vsel %vm359_vm4, %v682_v33, %v684_v42  ;;  %v765_v19 = vrot.slane %v737_v11, 3 }
  0xe0   : > { %v741_v27 = vmul.f32 %v729_v48, %v2586_v6  ;;  %v939_v11 = vmul.f32 %v935_v3, %v2511_v14 }
  0xe1   : > { %v686_v44 = vrot.slane %v658_v37, 2 }
  0xe2   : > { %v772_v37 = vrot.slane %v741_v27, 3 }
  0xe3   : > { %908 = vrot.lane.b32.xlu1 %v889_v38, %s2334_s4  ;;  %910 = vrot.lane.b32.xlu0 %v890_v39, %s2334_s4  ;;  %v659_v38 = vmul.f32 %v651_v5, %v2533_v28  ;;  %v680_v39 = vsel %vm359_vm4, %v677_v26, %v679_v29  ;;  %v767_v26 = vrot.slane %v738_v17, 3  ;;  %v807_v29 = vstv %s2099_s7  ;;  %s3396_s7 = sld [smem:[#allocation3 + $0x84]] }
  0xe4   : > { %v817_v58 = vmul.f32 %v807_v29, %v2538_v30 }
  0xe7   : > { %912 = vrot.lane.b32.xlu1 %v891_v45, %s2334_s4  ;;  %914 = vrot.lane.b32.xlu0 %v892_v46, %s2334_s4  ;;  %v687_v45 = vrot.slane %v659_v38, 2  ;;  %v661_v46 = vmul.f32 %v651_v5, %v2538_v30  ;;  %v810_v38 = vmul.f32 %v807_v29, %v2555_v41 }
  0xe9   : > { %v691_v54 = vrot.slane %v661_v46, 2  ;;  %v835_v47 = vrot.slane %v810_v38, 4 }
  0xeb   : > { %916 = vrot.lane.b32.xlu1 %v893_v53, %s2334_s4  ;;  %618 = vrot.lane.b32.xlu0 %v600_v57, %s2333_s19  ;;  %v688_v53 = vsel %vm359_vm4, %v686_v44, %v687_v45  ;;  %v730_v57 = vmul.f32 %v729_v48, %v2513_v15  ;;  %v693_v63 = vsel %vm359_vm4, %v691_v54, %v692_v55 }
  0xec   : > { %v812_v44 = vmul.f32 %v807_v29, %v2525_v24  ;;  %v815_v54 = vmul.f32 %v807_v29, %v2533_v28 }
  0xed   : > { %v754_v2 = vrot.slane %v730_v57, 3  ;;  %v816_v57 = vmul.f32 %v807_v29, %v2577_v60 }
  0xee   : > { %v838_v52 = vrot.slane %v812_v44, 4 }
  0xef   : > { %620 = vrot.lane.b32.xlu1 %v602_v61, %s2333_s19  ;;  %622 = vrot.lane.b32.xlu0 %v605_v62, %s2333_s19  ;;  %v734_v61 = vmul.f32 %v729_v48, %v2525_v24  ;;  %v690_v62 = vsel %vm359_vm4, %v687_v45, %v689_v51  ;;  %v756_v9 = vsel %vm422_vm5, %v754_v2, %v755_v1  ;;  %v845_v1 = vrot.slane %v816_v57, 4 }
  0xf0   : > { %v847_v2 = vrot.slane %v817_v58, 4 }
  0xf1   : > { %v760_v5 = vrot.slane %v734_v61, 3 }
  0xf3   : > { %624 = vrot.lane.b32.xlu1 %v607_v7, %s2333_s19  ;;  %626 = vrot.lane.b32.xlu0 %v610_v10, %s2333_s19  ;;  %v735_v7 = vmul.f32 %v729_v48, %v2566_v49  ;;  %v736_v10 = vmul.f32 %v729_v48, %v2529_v25  ;;  %v761_v13 = vsel %vm422_vm5, %v759_v4, %v760_v5 }
  0xf5   : > { %v762_v16 = vrot.slane %v735_v7, 3  ;;  %v764_v18 = vrot.slane %v736_v10, 3  ;;  %v819_v7 = vmul.f32 %v807_v29, %v2586_v6  ;;  %v938_v10 = vmul.f32 %v935_v3, %v2555_v41 }
  0xf7   : > { %628 = vrot.lane.b32.xlu1 %v612_v21, %s2333_s19  ;;  %630 = vrot.lane.b32.xlu0 %v615_v22, %s2333_s19  ;;  %v739_v21 = vmul.f32 %v729_v48, %v2538_v30  ;;  %v740_v22 = vmul.f32 %v729_v48, %v2541_v32  ;;  %v763_v23 = vsel %vm422_vm5, %v760_v5, %v762_v16  ;;  %v850_v17 = vrot.slane %v819_v7, 4 }
  0xf8   : > { %v766_v31 = vsel %vm422_vm5, %v764_v18, %v765_v19 }
  0xf9   : > { %v769_v33 = vrot.slane %v739_v21, 3  ;;  %v770_v34 = vrot.slane %v740_v22, 3  ;;  %v963_v21 = vrot.slane %v938_v10, 1  ;;  %v965_v22 = vrot.slane %v939_v11, 1 }
  0xfb   : > { %632 = vrot.lane.b32.xlu1 %v617_v35, %s2333_s19  ;;  %696 = vrot.lane.b32.xlu0 %v678_v36, %s2333_s19  ;;  %v809_v35 = vmul.f32 %v807_v29, %v2520_v20  ;;  %v808_v36 = vmul.f32 %v807_v29, %v2513_v15  ;;  %v771_v42 = vsel %vm422_vm5, %v769_v33, %v770_v34 }
  0xfc   : > { %v773_v46 = vsel %vm422_vm5, %v770_v34, %v772_v37  ;;  %v943_v33 = vmul.f32 %v935_v3, %v2533_v28  ;;  %v946_v37 = vmul.f32 %v935_v3, %v2541_v32 }
  0xfd   : > { %v833_v43 = vrot.slane %v809_v35, 4  ;;  %v832_v45 = vrot.slane %v808_v36, 4  ;;  %v944_v35 = vmul.f32 %v935_v3, %v2577_v60  ;;  %v945_v36 = vmul.f32 %v935_v3, %v2538_v30 }
  0xff   : > { %698 = vrot.lane.b32.xlu1 %v680_v39, %s2333_s19  ;;  %700 = vrot.lane.b32.xlu0 %v683_v40, %s2333_s19  ;;  %v811_v39 = vmul.f32 %v807_v29, %v2511_v14  ;;  %v768_v40 = vsel %vm422_vm5, %v765_v19, %v767_v26  ;;  %v834_v51 = vsel %vm485_vm6, %v832_v45, %v833_v43  ;;  %v973_v44 = vrot.slane %v944_v35, 1 }
 0x100   : > { %v836_v55 = vsel %vm485_vm6, %v833_v43, %v835_v47  ;;  %v941_v26 = vmul.f32 %v935_v3, %v2566_v49  ;;  %v1013_v43 = vstv %s2102_s27  ;;  %v975_v45 = vrot.slane %v945_v36, 1  ;;  %s2336_s27 = smov 124  }
 0x101   : > { %v837_v48 = vrot.slane %v811_v39, 4  ;;  %v947_v47 = vmul.f32 %v935_v3, %v2586_v6  ;;  %v1016_v57 = vmul.f32 %v1013_v43, %v2555_v41  ;;  %v1017_v58 = vmul.f32 %v1013_v43, %v2511_v14 }
 0x102   : > { %v968_v39 = vrot.slane %v941_v26, 1  ;;  %v1022_v11 = vmul.f32 %v1013_v43, %v2577_v60  ;;  %v1091_v26 = vstv %s2103_s8  ;;  %s2113_s8 = sld [smem:[#allocation3 + $0x184]] }
 0x103   : > { %702 = vrot.lane.b32.xlu1 %v685_v50, %s2333_s19  ;;  %704 = vrot.lane.b32.xlu0 %v688_v53, %s2333_s19  ;;  %v813_v50 = vmul.f32 %v807_v29, %v2566_v49  ;;  %v814_v53 = vmul.f32 %v807_v29, %v2529_v25  ;;  %v839_v59 = vsel %vm485_vm6, %v837_v48, %v838_v52 }
 0x105   : > { %v840_v56 = vrot.slane %v813_v50, 4  ;;  %v842_v61 = vrot.slane %v814_v53, 4 }
 0x107   : > { %706 = vrot.lane.b32.xlu1 %v690_v62, %s2333_s19  ;;  %708 = vrot.lane.b32.xlu0 %v693_v63, %s2333_s19  ;;  %v843_v62 = vrot.slane %v815_v54, 4  ;;  %v818_v63 = vmul.f32 %v807_v29, %v2541_v32  ;;  %v841_v0 = vsel %vm485_vm6, %v838_v52, %v840_v56  ;;  %v1014_v52 = vmul.f32 %v1013_v43, %v2513_v15 }
 0x109   : > { %v844_v4 = vsel %vm485_vm6, %v842_v61, %v843_v62  ;;  %v848_v5 = vrot.slane %v818_v63, 4  ;;  %v1038_v61 = vrot.slane %v1014_v52, 2  ;;  %v1019_v63 = vmul.f32 %v1013_v43, %v2566_v49 }
 0x10a   : > { %v1097_v52 = vmul.f32 %v1091_v26, %v2566_v49 }
 0x10b   : > { %710 = vrot.lane.b32.xlu1 %v695_v8, %s2333_s19  ;;  %774 = vrot.lane.b32.xlu0 %v756_v9, %s2333_s19  ;;  %v937_v8 = vmul.f32 %v935_v3, %v2520_v20  ;;  %v936_v9 = vmul.f32 %v935_v3, %v2513_v15  ;;  %v849_v16 = vsel %vm485_vm6, %v847_v2, %v848_v5 }
 0x10c   : > { %v851_v27 = vsel %vm485_vm6, %v848_v5, %v850_v17  ;;  %v1024_v17 = vmul.f32 %v1013_v43, %v2541_v32 }
 0x10d   : > { %v961_v18 = vrot.slane %v937_v8, 1  ;;  %v960_v19 = vrot.slane %v936_v9, 1  ;;  %v1046_v8 = vrot.slane %v1019_v63, 2  ;;  %v1100_v63 = vmul.f32 %v1091_v26, %v2577_v60 }
 0x10f   : > { %776 = vrot.lane.b32.xlu1 %v758_v12, %s2333_s19  ;;  %778 = vrot.lane.b32.xlu0 %v761_v13, %s2333_s19  ;;  %v940_v12 = vmul.f32 %v935_v3, %v2525_v24  ;;  %v846_v13 = vsel %vm485_vm6, %v843_v62, %v845_v1  ;;  %v962_v29 = vsel %vm296_vm3, %v960_v19, %v961_v18 }
 0x110   : > { %v964_v34 = vsel %vm296_vm3, %v961_v18, %v963_v21  ;;  %v1021_v1 = vmul.f32 %v1013_v43, %v2533_v28 }
 0x112   : > { %v1049_v10 = vrot.slane %v1021_v1, 2 }
 0x113   : > { %780 = vrot.lane.b32.xlu1 %v763_v23, %s2333_s19  ;;  %782 = vrot.lane.b32.xlu0 %v766_v31, %s2333_s19  ;;  %v966_v23 = vrot.slane %v940_v12, 1  ;;  %v942_v31 = vmul.f32 %v935_v3, %v2529_v25  ;;  %v1041_v3 = vrot.slane %v1016_v57, 2 }
 0x115   : > { %v967_v38 = vsel %vm296_vm3, %v965_v22, %v966_v23  ;;  %v969_v48 = vsel %vm296_vm3, %v966_v23, %v968_v39  ;;  %v1051_v23 = vrot.slane %v1022_v11, 2  ;;  %v1096_v39 = vmul.f32 %v1091_v26, %v2525_v24 }
 0x116   : > { %v1169_v11 = vstv %s2104_s14  ;;  %s2114_s14 = sld [smem:[#allocation3 + $0x204]] }
 0x117   : > { %784 = vrot.lane.b32.xlu1 %v768_v40, %s2333_s19  ;;  %786 = vrot.lane.b32.xlu0 %v771_v42, %s2333_s19  ;;  %v970_v40 = vrot.slane %v942_v31, 1  ;;  %v971_v42 = vrot.slane %v943_v33, 1  ;;  %v1025_v31 = vmul.f32 %v1013_v43, %v2586_v6  ;;  %v1093_v33 = vmul.f32 %v1091_v26, %v2520_v20 }
 0x119   : > { %v972_v50 = vsel %vm296_vm3, %v970_v40, %v971_v42  ;;  %v974_v53 = vsel %vm296_vm3, %v971_v42, %v973_v44  ;;  %v1052_v40 = vsel %vm359_vm4, %v1049_v10, %v1051_v23  ;;  %v1117_v44 = vrot.slane %v1093_v33, 3 }
 0x11b   : > { %788 = vrot.lane.b32.xlu1 %v773_v46, %s2333_s19  ;;  %852 = vrot.lane.b32.xlu0 %v834_v51, %s2333_s19  ;;  %v976_v46 = vrot.slane %v946_v37, 1  ;;  %v1015_v51 = vmul.f32 %v1013_v43, %v2520_v20  ;;  %v1094_v37 = vmul.f32 %v1091_v26, %v2555_v41 }
 0x11d   : > { %v977_v54 = vsel %vm296_vm3, %v975_v45, %v976_v46  ;;  %v1039_v56 = vrot.slane %v1015_v51, 2  ;;  %v1122_v51 = vrot.slane %v1096_v39, 3 }
 0x11f   : > { %854 = vrot.lane.b32.xlu1 %v836_v55, %s2333_s19  ;;  %856 = vrot.lane.b32.xlu0 %v839_v59, %s2333_s19  ;;  %v978_v55 = vrot.slane %v947_v47, 1  ;;  %v1018_v59 = vmul.f32 %v1013_v43, %v2525_v24  ;;  %v1040_v2 = vsel %vm359_vm4, %v1038_v61, %v1039_v56  ;;  %v1042_v12 = vsel %vm359_vm4, %v1039_v56, %v1041_v3 }
 0x120   : > { %v1099_v56 = vmul.f32 %v1091_v26, %v2533_v28  ;;  %v1102_v3 = vmul.f32 %v1091_v26, %v2541_v32 }
 0x121   : > { %v979_v62 = vsel %vm296_vm3, %v976_v46, %v978_v55  ;;  %v1044_v5 = vrot.slane %v1018_v59, 2  ;;  %v1098_v55 = vmul.f32 %v1091_v26, %v2529_v25 }
 0x122   : > { %v1127_v1 = vrot.slane %v1099_v56, 3 }
 0x123   : > { %858 = vrot.lane.b32.xlu1 %v841_v0, %s2333_s19  ;;  %860 = vrot.lane.b32.xlu0 %v844_v4, %s2333_s19  ;;  %v1020_v0 = vmul.f32 %v1013_v43, %v2529_v25  ;;  %v1043_v4 = vrot.slane %v1017_v58, 2  ;;  %v1047_v21 = vsel %vm359_vm4, %v1044_v5, %v1046_v8 }
 0x125   : > { %v1048_v9 = vrot.slane %v1020_v0, 2  ;;  %v1126_v0 = vrot.slane %v1098_v55, 3 }
 0x127   : > { %862 = vrot.lane.b32.xlu1 %v846_v13, %s2333_s19  ;;  %864 = vrot.lane.b32.xlu0 %v849_v16, %s2333_s19  ;;  %v1045_v13 = vsel %vm359_vm4, %v1043_v4, %v1044_v5  ;;  %v1023_v16 = vmul.f32 %v1013_v43, %v2538_v30  ;;  %v1050_v22 = vsel %vm359_vm4, %v1048_v9, %v1049_v10  ;;  %v1056_v43 = vrot.slane %v1025_v31, 2 }
 0x128   : > { %v1129_v9 = vrot.slane %v1100_v63, 3  ;;  %v1103_v10 = vmul.f32 %v1091_v26, %v2586_v6 }
 0x12b   : > { %866 = vrot.lane.b32.xlu1 %v851_v27, %s2333_s19  ;;  %980 = vrot.lane.b32.xlu0 %v962_v29, %s2334_s4  ;;  %v1053_v27 = vrot.slane %v1023_v16, 2  ;;  %v1054_v29 = vrot.slane %v1024_v17, 2  ;;  %v1132_v16 = vrot.slane %v1102_v3, 3  ;;  %v1171_v17 = vmul.f32 %v1169_v11, %v2520_v20  ;;  %s2852_s19 = sld [smem:[#allocation3 + $0x83]] }
 0x12d   : > { %v1055_v42 = vsel %vm359_vm4, %v1053_v27, %v1054_v29  ;;  %v1130_v27 = vsel %vm422_vm5, %v1127_v1, %v1129_v9  ;;  %v1195_v33 = vrot.slane %v1171_v17, 4  ;;  %v1181_v17 = vmul.f32 %v1169_v11, %v2586_v6 }
 0x12f   : > { %982 = vrot.lane.b32.xlu1 %v964_v34, %s2334_s4  ;;  %984 = vrot.lane.b32.xlu0 %v967_v38, %s2334_s4  ;;  %v1092_v34 = vmul.f32 %v1091_v26, %v2513_v15  ;;  %v1095_v38 = vmul.f32 %v1091_v26, %v2511_v14 }
 0x131   : > { %v1116_v45 = vrot.slane %v1092_v34, 3  ;;  %v1173_v34 = vmul.f32 %v1169_v11, %v2511_v14 }
 0x133   : > { %986 = vrot.lane.b32.xlu1 %v969_v48, %s2334_s4  ;;  %988 = vrot.lane.b32.xlu0 %v972_v50, %s2334_s4  ;;  %v1119_v48 = vrot.slane %v1094_v37, 3  ;;  %v1121_v50 = vrot.slane %v1095_v38, 3  ;;  %v1174_v37 = vmul.f32 %v1169_v11, %v2525_v24 }
 0x135   : > { %v1120_v59 = vsel %vm422_vm5, %v1117_v44, %v1119_v48  ;;  %v1123_v61 = vsel %vm422_vm5, %v1121_v50, %v1122_v51  ;;  %v1199_v50 = vrot.slane %v1173_v34, 4  ;;  %v2841_v34 = vstv %s2105_s17 }
 0x137   : > { %990 = vrot.lane.b32.xlu1 %v974_v53, %s2334_s4  ;;  %992 = vrot.lane.b32.xlu0 %v977_v54, %s2334_s4  ;;  %v1057_v53 = vsel %vm359_vm4, %v1054_v29, %v1056_v43  ;;  %v1118_v54 = vsel %vm422_vm5, %v1116_v45, %v1117_v44  ;;  %v1172_v29 = vmul.f32 %v1169_v11, %v2555_v41 }
 0x138   : > { %v1175_v44 = vmul.f32 %v1169_v11, %v2566_v49  ;;  %v1176_v45 = vmul.f32 %v1169_v11, %v2529_v25 }
 0x139   : > { %v1197_v43 = vrot.slane %v1172_v29, 4 }
 0x13a   : > { %v1202_v56 = vrot.slane %v1175_v44, 4 }
 0x13b   : > { %994 = vrot.lane.b32.xlu1 %v979_v62, %s2334_s4  ;;  %1058 = vrot.lane.b32.xlu0 %v1040_v2, %s2334_s4  ;;  %v1124_v62 = vrot.slane %v1097_v52, 3  ;;  %v1101_v2 = vmul.f32 %v1091_v26, %v2538_v30  ;;  %v1134_v26 = vrot.slane %v1103_v10, 3  ;;  %v1177_v52 = vmul.f32 %v1169_v11, %v2533_v28 }
 0x13c   : > { %v1198_v55 = vsel %vm485_vm6, %v1195_v33, %v1197_v43  ;;  %v2850_v43 = vstv %s2093_s23 }
 0x13d   : > { %v2721_v7 = vpop.permute.xlu0 %540  ;;  %v1125_v8 = vsel %vm422_vm5, %v1122_v51, %v1124_v62  ;;  %v1200_v51 = vrot.slane %v1174_v37, 4  ;;  %v1205_v63 = vrot.slane %v1177_v52, 4  ;;  %v1248_v52 = vmul.f32 %v2841_v34, %v2513_v15 }
 0x13f   : > { %1060 = vrot.lane.b32.xlu1 %v1042_v12, %s2334_s4  ;;  %1062 = vrot.lane.b32.xlu0 %v1045_v13, %s2334_s4  ;;  %v1128_v12 = vsel %vm422_vm5, %v1126_v0, %v1127_v1  ;;  %v1131_v13 = vrot.slane %v1101_v2, 3  ;;  %v1201_v62 = vsel %vm485_vm6, %v1199_v50, %v1200_v51  ;;  %v1179_v0 = vmul.f32 %v1169_v11, %v2538_v30 }
 0x140   : > { %v1180_v1 = vmul.f32 %v1169_v11, %v2541_v32  ;;  %v2818_v2 = vstv %s2091_s16  ;;  %v1203_v9 = vsel %vm485_vm6, %v1200_v51, %v1202_v56  ;;  %s3759_s16 = scalar_lea.vmem [#allocation8], %s2089_s3  ;;  %s2124_s3 = sshll.u32 %s2376_s13, 10 }
 0x141   : > { %v2730_v18 = vpop.permute.xlu1 %542  ;;  %v2732_v19 = vpop.permute.xlu0 %544  ;;  %v1133_v31 = vsel %vm422_vm5, %v1131_v13, %v1132_v16  ;;  %v1209_v13 = vrot.slane %v1179_v0, 4  ;;  %v398_v0 = vmul.f32 %v2850_v43, %v2513_v15  ;;  %s1994_s17 = sshll.u32 %s3759_s16, 4  ;;  %s3781_s23 = scalar_lea.hbm %s3831_s2, %s2124_s3  ;;  %s3783_s17 = int_to_ptr.vmem [resolvable:$true] %s1994_s17 }
 0x142   : > { %s1980_s13 = scalar_lea.sflag [#allocation5], %s2487_s28 }
 0x143   : > { %1064 = vrot.lane.b32.xlu1 %v1047_v21, %s2334_s4  ;;  %1066 = vrot.lane.b32.xlu0 %v1050_v22, %s2334_s4  ;;  %v1170_v21 = vmul.f32 %v1169_v11, %v2513_v15 }
 0x145   : > { %v2741_v35 = vpop.permute.xlu1 %546  ;;  %v2743_v36 = vpop.permute.xlu0 %548  ;;  %v1194_v38 = vrot.slane %v1170_v21, 4  ;;  %v2829_v21 = vmul.f32 %v2818_v2, %v2520_v20 }
 0x146   : > { %3851 = vst [vmem:[#allocation12_spill] sm:$0xff] %v2743_v36 }
 0x147   : > { %1068 = vrot.lane.b32.xlu1 %v1052_v40, %s2334_s4  ;;  %1070 = vrot.lane.b32.xlu0 %v1055_v42, %s2334_s4  ;;  %v1135_v42 = vsel %vm422_vm5, %v1132_v16, %v1134_v26  ;;  %v1196_v48 = vsel %vm485_vm6, %v1194_v38, %v1195_v33  ;;  %v1210_v16 = vrot.slane %v1180_v1, 4  ;;  %v298_v37 = vrot.slane %v2829_v21, 1 }
 0x148   : > { %v2846_v38 = vstv %s252_s25 }
 0x149   : > { %v2752_v46 = vpop.permute.xlu1 %550  ;;  %v2754_v47 = vpop.permute.xlu0 %552  ;;  %v1211_v33 = vsel %vm485_vm6, %v1209_v13, %v1210_v16 }
 0x14a   : > { %3852 = vst [vmem:[#allocation13_spill] sm:$0xff] %v2752_v46 }
 0x14b   : > { %1072 = vrot.lane.b32.xlu1 %v1057_v53, %s2334_s4  ;;  %1136 = vrot.lane.b32.xlu0 %v1118_v54, %s2334_s4 }
 0x14d   : > { %v2763_v57 = vpop.permute.xlu1 %554  ;;  %v2765_v58 = vpop.permute.xlu0 %902 }
 0x14e   : > { %3853 = vst [vmem:[#allocation14_spill] sm:$0xff] %v2763_v57  ;;  %3854 = vst [vmem:[#allocation15_spill] sm:$0xff] %v2765_v58 }
 0x14f   : > { %1138 = vrot.lane.b32.xlu1 %v1120_v59, %s2334_s4  ;;  %1140 = vrot.lane.b32.xlu0 %v1123_v61, %s2334_s4  ;;  %v1204_v59 = vrot.slane %v1176_v45, 4  ;;  %v1178_v61 = vmul.f32 %v1169_v11, %v2577_v60  ;;  %v1212_v11 = vrot.slane %v1181_v17, 4  ;;  %v2858_v45 = vstv %s2094_s20  ;;  %s2255_s20 = scalar_lea.vmem %s3783_s17, 1024 }
 0x150   : > { %v2874_v56 = vmul.f32 %v2858_v45, %v2520_v20  ;;  %v461_v1 = vmul.f32 %v2858_v45, %v2513_v15  ;;  %v1250_v17 = vmul.f32 %v2841_v34, %v2511_v14  ;;  %p2256_p12 = scmp.ne.s32.totalorder %s3783_s17, %s2255_s20 }
 0x151   : > { %v2774_v4 = vpop.permute.xlu1 %904  ;;  %v2776_v5 = vpop.permute.xlu0 %906  ;;  %v1207_v10 = vrot.slane %v1178_v61, 4 }
 0x152   : > { %3855 = vst [vmem:[#allocation16_spill] sm:$0xff] %v2774_v4  ;;  %3856 = vst [vmem:[#allocation17_spill] sm:$0xff] %v2776_v5  ;;  %v2934_v5 = vmul.f32 %v2858_v45, %v2555_v41  ;;  %p2257_p7 = pnand %p2256_p12, %p3972_p13 }
 0x153   : > { %1142 = vrot.lane.b32.xlu1 %v1125_v8, %s2334_s4  ;;  %1144 = vrot.lane.b32.xlu0 %v1128_v12, %s2334_s4  ;;  %v1206_v12 = vsel %vm485_vm6, %v1204_v59, %v1205_v63  ;;  %v1213_v59 = vsel %vm485_vm6, %v1210_v16, %v1212_v11  ;;  %v1249_v16 = vmul.f32 %v2841_v34, %v2520_v20 }
 0x154   : > { %p2258_p3 = pneg %p2257_p7 }
 0x155   : > { %v2785_v22 = vpop.permute.xlu1 %908  ;;  %v2787_v23 = vpop.permute.xlu0 %910 }
 0x156   : > { %3857 = vst [vmem:[#allocation18_spill] sm:$0xff] %v2785_v22  ;;  %3858 = vst [vmem:[#allocation19_spill] sm:$0xff] %v2787_v23  ;;  %v400_v22 = vmul.f32 %v2850_v43, %v2555_v41 }
 0x157   : > { %1146 = vrot.lane.b32.xlu1 %v1130_v27, %s2334_s4  ;;  %1148 = vrot.lane.b32.xlu0 %v1133_v31, %s2334_s4  ;;  %v272_v27 = vmul.f32 %v2818_v2, %v2513_v15  ;;  %v1208_v31 = vsel %vm485_vm6, %v1205_v63, %v1207_v10  ;;  %v254_v63 = vmul.f32 %v2846_v38, %v2513_v15 }
 0x159   : > { %v2796_v39 = vpop.permute.xlu1 %912  ;;  %v2798_v40 = vpop.permute.xlu0 %914 }
 0x15a   : > { %3859 = vst [vmem:[#allocation20_spill] sm:$0xff] %v2796_v39  ;;  %3860 = vst [vmem:[#allocation21_spill] sm:$0xff] %v2798_v40 }
 0x15b   : > { %1150 = vrot.lane.b32.xlu1 %v1135_v42, %s2334_s4  ;;  %1214 = vrot.lane.b32.xlu0 %v1196_v48, %s2334_s4  ;;  %v2848_v42 = vstv %s2092_s26  ;;  %v297_v48 = vrot.slane %v272_v27, 1  ;;  %v3835_v27 = vrot.slane %v2874_v56, 4 }
 0x15c   : > { %v2856_v44 = vmul.f32 %v2848_v42, %v2520_v20  ;;  %v337_v11 = vmul.f32 %v2848_v42, %v2555_v41 }
 0x15d   : > { %v2807_v53 = vpop.permute.xlu1 %916  ;;  %v2809_v54 = vpop.permute.xlu0 %618  ;;  %v299_v61 = vsel %vm296_vm3, %v297_v48, %v298_v37  ;;  %v486_v48 = vrot.slane %v461_v1, 4 }
 0x15e   : > { %3861 = vst [vmem:[#allocation22_spill] sm:$0xff] %v2807_v53  ;;  %3862 = vst [vmem:[#allocation23_spill] sm:$0xff] %v2809_v54  ;;  %v361_v10 = vrot.slane %v2856_v44, 2  ;;  %v423_v44 = vrot.slane %v398_v0, 3 }
 0x15f   : > { %1216 = vrot.lane.b32.xlu1 %v1198_v55, %s2334_s4  ;;  %1218 = vrot.lane.b32.xlu0 %v1201_v62, %s2334_s4  ;;  %v2870_v55 = vmul.f32 %v2850_v43, %v2520_v20  ;;  %v335_v62 = vmul.f32 %v2848_v42, %v2513_v15 }
 0x161   : > { %v2820_v3 = vpop.permute.xlu1 %620  ;;  %v2822_v8 = vpop.permute.xlu0 %622  ;;  %v3873_v0 = vrot.slane %v2870_v55, 3  ;;  %v3878_v40 = vrot.slane %v2870_v55, 3 }
 0x162   : > { %3863 = vst [vmem:[#allocation24_spill] sm:$0xff] %v2820_v3  ;;  %3864 = vst [vmem:[#allocation25_spill] sm:$0xff] %v2822_v8  ;;  %v3149_v8 = vld [vmem:[#allocation2 + $0x40] sm:$0xf]  ;;  %v3155_v3 = vld [vmem:[#allocation2 + $0x48] sm:$0xff] }
 0x163   : > { %1220 = vrot.lane.b32.xlu1 %v1203_v9, %s2334_s4  ;;  %1222 = vrot.lane.b32.xlu0 %v1206_v12, %s2334_s4  ;;  %v274_v9 = vmul.f32 %v2818_v2, %v2555_v41  ;;  %v425_v1 = vsel %vm422_vm5, %v423_v44, %v3873_v0  ;;  %v275_v44 = vmul.f32 %v2818_v2, %v2511_v14 }
 0x164   : > { %v256_v0 = vmul.f32 %v2846_v38, %v2511_v14 }
 0x165   : > { %v2835_v26 = vpop.permute.xlu1 %624  ;;  %v2837_v29 = vpop.permute.xlu0 %626 }
 0x166   : > { %3865 = vst [vmem:[#allocation26_spill] sm:$0xff] %v2835_v26  ;;  %3866 = vst [vmem:[#allocation27_spill] sm:$0xff] %v2837_v29 }
 0x167   : > { %1224 = vrot.lane.b32.xlu1 %v1208_v31, %s2334_s4  ;;  %1226 = vrot.lane.b32.xlu0 %v1211_v33, %s2334_s4  ;;  %v325_v31 = vadd.f32 %v299_v61, %v254_v63  ;;  %v360_v33 = vrot.slane %v335_v62, 2  ;;  %v1251_v61 = vmul.f32 %v2841_v34, %v2525_v24  ;;  %v1252_v62 = vmul.f32 %v2841_v34, %v2529_v25 }
 0x168   : > { %v2918_v63 = vstv %s2866_s29 }
 0x169   : > { %v2860_v50 = vpop.permute.xlu1 %628  ;;  %v2862_v51 = vpop.permute.xlu0 %630  ;;  %v362_v39 = vsel %vm359_vm4, %v360_v33, %v361_v10  ;;  %v363_v33 = vrot.slane %v337_v11, 2  ;;  %v2945_v11 = vmul.f32 %v2818_v2, %v2525_v24 }
 0x16a   : > { %3867 = vst [vmem:[#allocation28_spill] sm:$0xff] %v2860_v50  ;;  %3868 = vst [vmem:[#allocation29_spill] sm:$0xff] %v2862_v51  ;;  %v426_v50 = vrot.slane %v400_v22, 3 }
 0x16b   : > { %1228 = vrot.lane.b32.xlu1 %v1213_v59, %s2334_s4  ;;  %1264 = vrot.lane.b32.xlu0 %v1248_v52, %s2335_s30  ;;  %v300_v52 = vrot.slane %v274_v9, 1  ;;  %v2906_v59 = vstv %s2852_s19  ;;  %v2926_v9 = vsel %vm485_vm6, %v486_v48, %v3835_v27  ;;  %s2970_s4 = sld [smem:[#allocation3 + $0x183]]  ;;  %s2337_s19 = smov [#allocation8]  }
 0x16c   : > { %v1298_v48 = vmul.f32 %v2906_v59, %v2513_v15  ;;  %v1301_v15 = vmul.f32 %v2906_v59, %v2511_v14  ;;  %v1302_v53 = vmul.f32 %v2906_v59, %v2525_v24  ;;  %s2259_s29 = sshll.u32 %s2337_s19, 4  ;;  %s2260_s29 = int_to_ptr.vmem [resolvable:$false] %s2259_s29 }
 0x16d   : > { %v2891_v12 = vpop.permute.xlu1 %632  ;;  %v2893_v13 = vpop.permute.xlu0 %696  ;;  %p2262_p6 = scmp.lt.s32.totalorder %s3783_s17, %s2260_s29 }
 0x16e   : > { %3869 = vst [vmem:[#allocation30_spill] sm:$0xff] %v2891_v12  ;;  %3870 = vst [vmem:[#allocation31_spill] sm:$0xff] %v2893_v13  ;;  %v1322_v22 = vrot.slane %v1298_v48, 1  ;;  %v1305_v48 = vmul.f32 %v2906_v59, %v2533_v28 }
 0x16f   : > { %1266 = vrot.lane.b32.xlu1 %v1249_v16, %s2335_s30  ;;  %1268 = vrot.lane.b32.xlu0 %v1250_v17, %s2335_s30  ;;  %v388_v16 = vadd.f32 %v362_v39, %v325_v31  ;;  %v1299_v17 = vmul.f32 %v2906_v59, %v2520_v20  ;;  %v255_v39 = vmul.f32 %v2846_v38, %v2520_v20 }
 0x170   : > { %v301_v31 = vsel %vm296_vm3, %v298_v37, %v300_v52  ;;  %v1253_v37 = vmul.f32 %v2841_v34, %v2533_v28  ;;  %v1254_v52 = vmul.f32 %v2841_v34, %v2538_v30  ;;  %v3882_v28 = vrot.slane %v2874_v56, 4 }
 0x171   : > { %v2909_v21 = vpop.permute.xlu1 %698  ;;  %v2911_v23 = vpop.permute.xlu0 %700  ;;  %v451_v27 = vadd.f32 %v425_v1, %v388_v16  ;;  %v1323_v4 = vrot.slane %v1299_v17, 1  ;;  %v326_v58 = vadd.f32 %v301_v31, %v255_v39  ;;  %v2975_v1 = vmul.f32 %v2848_v42, %v2525_v24 }
 0x172   : > { %3871 = vst [vmem:[#allocation32_spill] sm:$0xff] %v2909_v21  ;;  %3872 = vst [vmem:[#allocation33_spill] sm:$0xff] %v2911_v23  ;;  %v1303_v39 = vmul.f32 %v2906_v59, %v2566_v49  ;;  %v1304_v31 = vmul.f32 %v2906_v59, %v2529_v25  ;;  %v489_v16 = vrot.slane %v2934_v5, 4  ;;  %v3879_v25 = vrot.slane %v2945_v11, 1 }
 0x173   : > { %1270 = vrot.lane.b32.xlu1 %v1251_v61, %s2335_s30  ;;  %1272 = vrot.lane.b32.xlu0 %v1252_v62, %s2335_s30  ;;  %v1300_v62 = vmul.f32 %v2906_v59, %v2555_v41  ;;  %v302_v41 = vrot.slane %v275_v44, 1  ;;  %v1324_v44 = vsel %vm296_vm3, %v1322_v22, %v1323_v4  ;;  %v3008_v5 = vmul.f32 %v2850_v43, %v2525_v24 }
 0x174   : > { %v1308_v24 = vmul.f32 %v2906_v59, %v2541_v32 }
 0x175   : > { %v2951_v20 = vpop.permute.xlu1 %702  ;;  %v2953_v61 = vpop.permute.xlu0 %704 }
 0x176   : > { %3874 = vst [vmem:[#allocation34_spill] sm:$0xff] %v2951_v20  ;;  %3875 = vst [vmem:[#allocation35_spill] sm:$0xff] %v2953_v61  ;;  %v364_v61 = vsel %vm359_vm4, %v361_v10, %v363_v33  ;;  %v338_v20 = vmul.f32 %v2848_v42, %v2511_v14  ;;  %v1255_v14 = vmul.f32 %v2841_v34, %v2541_v32  ;;  %v1325_v33 = vrot.slane %v1300_v62, 1 }
 0x177   : > { %1274 = vrot.lane.b32.xlu1 %v1253_v37, %s2335_s30  ;;  %1276 = vrot.lane.b32.xlu0 %v1254_v52, %s2335_s30  ;;  %v1327_v37 = vrot.slane %v1301_v15, 1  ;;  %v1328_v52 = vrot.slane %v1302_v53, 1  ;;  %v427_v34 = vsel %vm422_vm5, %v3878_v40, %v426_v50  ;;  %v304_v53 = vsel %vm296_vm3, %v302_v41, %v3879_v25  ;;  %v3002_v15 = vld [vmem:[#allocation2 + $0x18] sm:$0xff] }
 0x178   : > { %v365_v62 = vrot.slane %v338_v20, 2  ;;  %v1326_v55 = vsel %vm296_vm3, %v1323_v4, %v1325_v33  ;;  %v1330_v20 = vrot.slane %v1303_v39, 1  ;;  %v1306_v41 = vmul.f32 %v2906_v59, %v2577_v60 }
 0x179   : > { %v2977_v17 = vpop.permute.xlu1 %706  ;;  %v2979_v10 = vpop.permute.xlu0 %708  ;;  %v1329_v22 = vsel %vm296_vm3, %v1327_v37, %v1328_v52  ;;  %v3023_v25 = vadd.f32 %v2926_v9, %v451_v27  ;;  %v490_v4 = vsel %vm485_vm6, %v3882_v28, %v489_v16  ;;  %v327_v33 = vadd.f32 %v304_v53, %v256_v0  ;;  %v3049_v28 = vld [vmem:[#allocation2 + $0x8] sm:$0xff] }
 0x17a   : > { %3876 = vst [vmem:[#allocation36_spill] sm:$0xff] %v2977_v17  ;;  %3877 = vst [vmem:[#allocation37_spill] sm:$0xff] %v2979_v10  ;;  %v389_v17 = vadd.f32 %v364_v61, %v326_v58  ;;  %v401_v58 = vmul.f32 %v3002_v15, %v2850_v43  ;;  %v1332_v61 = vrot.slane %v1304_v31, 1  ;;  %v3031_v60 = vstv %s2970_s4 }
 0x17b   : > { %1278 = vrot.lane.b32.xlu1 %v1255_v14, %s2335_s30  ;;  %1342 = vrot.lane.b32.xlu0 %v1324_v44, %s2335_s30  ;;  %v1333_v14 = vrot.slane %v1305_v48, 1  ;;  %v1307_v44 = vmul.f32 %v2906_v59, %v2538_v30  ;;  %v3836_v30 = vrot.slane %v3008_v5, 3  ;;  %v3036_v32 = vmul.f32 %v3002_v15, %v2858_v45 }
 0x17c   : > { %v452_v39 = vadd.f32 %v427_v34, %v389_v17  ;;  %v428_v31 = vrot.slane %v401_v58, 3  ;;  %v3883_v27 = vrot.slane %v2975_v1, 2  ;;  %v1331_v16 = vsel %vm296_vm3, %v1328_v52, %v1330_v20 }
 0x17d   : > { %v3010_v40 = vpop.permute.xlu1 %710  ;;  %v3012_v50 = vpop.permute.xlu0 %774  ;;  %v1335_v37 = vrot.slane %v1306_v41, 1  ;;  %v1309_v17 = vmul.f32 %v2906_v59, %v2586_v6  ;;  %v1334_v48 = vsel %vm296_vm3, %v1332_v61, %v1333_v14  ;;  %v1337_v34 = vrot.slane %v1307_v44, 1  ;;  %v3072_v41 = vld [vmem:[#allocation2] sm:$0xff] }
 0x17e   : > { %3880 = vst [vmem:[#allocation38_spill] sm:$0xff] %v3010_v40  ;;  %3881 = vst [vmem:[#allocation39_spill] sm:$0xff] %v3012_v50  ;;  %v367_v56 = vsel %vm359_vm4, %v365_v62, %v3883_v27  ;;  %v1338_v53 = vrot.slane %v1308_v24, 1  ;;  %v1377_v62 = vmul.f32 %v3049_v28, %v2918_v63  ;;  %v277_v52 = vmul.f32 %v2818_v2, %v2566_v49  ;;  %v3083_v27 = vld [vmem:[#allocation2 + $0x10] sm:$0xf] }
 0x17f   : > { %1344 = vrot.lane.b32.xlu1 %v1326_v55, %s2335_s30  ;;  %1346 = vrot.lane.b32.xlu0 %v1329_v22, %s2335_s30  ;;  %v390_v58 = vadd.f32 %v367_v56, %v327_v33  ;;  %v3053_v55 = vld [vmem:[#allocation2 + $0x20] sm:$0xff]  ;;  %v3064_v6 = vstv %s2996_s5  ;;  %v3066_v59 = vadd.f32 %v490_v4, %v452_v39  ;;  %v430_v20 = vsel %vm422_vm5, %v428_v31, %v3836_v30 }
 0x180   : > { %v3057_v22 = vmul.f32 %v3053_v55, %v2858_v45  ;;  %v1376_v44 = vmul.f32 %v3072_v41, %v2918_v63  ;;  %v257_v49 = vmul.f32 %v3053_v55, %v2846_v38  ;;  %v1336_v4 = vsel %vm296_vm3, %v1333_v14, %v1335_v37  ;;  %3888 = vst [vmem:[#allocation44_spill] sm:$0xff] %v3083_v27 }
 0x181   : > { %v3041_v9 = vpop.permute.xlu1 %776  ;;  %v3043_v0 = vpop.permute.xlu0 %778  ;;  %v1340_v39 = vrot.slane %v1309_v17, 1  ;;  %v1378_v31 = vmul.f32 %v3083_v27, %v2918_v63  ;;  %v1339_v56 = vsel %vm296_vm3, %v1337_v34, %v1338_v53  ;;  %v1380_v61 = vmul.f32 %v3053_v55, %v2918_v63  ;;  %v3106_v34 = vld [vmem:[#allocation2 + $0x30] sm:$0xff] }
 0x182   : > { %3884 = vst [vmem:[#allocation40_spill] sm:$0xff] %v3041_v9  ;;  %3885 = vst [vmem:[#allocation41_spill] sm:$0xff] %v3043_v0  ;;  %v3092_v30 = vadd.f32 %v430_v20, %v390_v58  ;;  %v3110_v58 = vld [vmem:[#allocation2 + $0x38] sm:$0xff]  ;;  %v1400_v20 = vrot.slane %v1376_v44, 2  ;;  %v1382_v26 = vmul.f32 %v3106_v34, %v2918_v63 }
 0x183   : > { %1348 = vrot.lane.b32.xlu1 %v1331_v16, %s2335_s30  ;;  %1350 = vrot.lane.b32.xlu0 %v1334_v48, %s2335_s30  ;;  %v1401_v16 = vrot.slane %v1377_v62, 2  ;;  %v1379_v48 = vmul.f32 %v3002_v15, %v2918_v63  ;;  %3889 = vst [vmem:[#allocation45_spill] sm:$0xff] %v3106_v34  ;;  %v278_v62 = vmul.f32 %v3106_v34, %v2818_v2  ;;  %v1403_v9 = vrot.slane %v1378_v31, 2 }
 0x184   : > { %v1406_v50 = vrot.slane %v1380_v61, 2  ;;  %v3128_v44 = vmul.f32 %v3110_v58, %v2918_v63  ;;  %v258_v31 = vmul.f32 %v3106_v34, %v2846_v38 }
 0x185   : > { %v3078_v24 = vpop.permute.xlu1 %780  ;;  %v3080_v33 = vpop.permute.xlu0 %782  ;;  %v1402_v23 = vsel %vm359_vm4, %v1400_v20, %v1401_v16  ;;  %v1405_v21 = vrot.slane %v1379_v48, 2  ;;  %v307_v20 = vrot.slane %v278_v62, 1  ;;  %v341_v48 = vmul.f32 %v3106_v34, %v2848_v42 }
 0x186   : > { %3886 = vst [vmem:[#allocation42_spill] sm:$0xff] %v3078_v24  ;;  %3887 = vst [vmem:[#allocation43_spill] sm:$0xff] %v3080_v33  ;;  %v305_v33 = vrot.slane %v277_v52, 1  ;;  %v3094_v24 = vld [vmem:[#allocation2 + $0x28] sm:$0xf]  ;;  %v3114_v52 = vmul.f32 %v3110_v58, %v2818_v2  ;;  %v1411_v61 = vrot.slane %v3128_v44, 2 }
 0x187   : > { %v340_v14 = vmul.f32 %v3094_v24, %v2848_v42  ;;  %v403_v37 = vmul.f32 %v3094_v24, %v2850_v43  ;;  %1352 = vrot.lane.b32.xlu1 %v1336_v4, %s2335_s30  ;;  %1354 = vrot.lane.b32.xlu0 %v1339_v56, %s2335_s30  ;;  %v3104_v17 = vmul.f32 %v3094_v24, %v2858_v45  ;;  %v370_v10 = vrot.slane %v341_v48, 2 }
 0x188   : > { %v1341_v56 = vsel %vm296_vm3, %v1338_v53, %v1340_v39  ;;  %v1381_v29 = vmul.f32 %v3094_v24, %v2918_v63  ;;  %v1407_v62 = vsel %vm359_vm4, %v1405_v21, %v1406_v50  ;;  %v3896_v21 = vrot.slane %v3008_v5, 3 }
 0x189   : > { %v3116_v0 = vpop.permute.xlu1 %784  ;;  %v3118_v4 = vpop.permute.xlu0 %786  ;;  %v368_v53 = vrot.slane %v340_v14, 2  ;;  %v431_v39 = vrot.slane %v403_v37, 3  ;;  %v1404_v14 = vsel %vm359_vm4, %v1401_v16, %v1403_v9  ;;  %v3895_v16 = vrot.slane %v2975_v1, 2 }
 0x18a   : > { %3890 = vst [vmem:[#allocation46_spill] sm:$0xff] %v3116_v0  ;;  %3891 = vst [vmem:[#allocation47_spill] sm:$0xff] %v3118_v4  ;;  %v3892_v0 = vrot.slane %v2945_v11, 1  ;;  %v3142_v11 = vmul.f32 %v3110_v58, %v2848_v42  ;;  %v1408_v37 = vrot.slane %v1381_v29, 2  ;;  %v3159_v4 = vld [vmem:[#allocation2 + $0x50] sm:$0xff]  ;;  %v3897_v13 = vrot.slane %v3114_v52, 1 }
 0x18b   : > { %1356 = vrot.lane.b32.xlu1 %v1341_v56, %s2335_s30  ;;  %1420 = vrot.lane.b32.xlu0 %v1402_v23, %s2335_s30  ;;  %v1410_v56 = vrot.slane %v1382_v26, 2  ;;  %v1384_v23 = vmul.f32 %v3149_v8, %v2918_v63  ;;  %v1386_v29 = vmul.f32 %v3159_v4, %v2918_v63  ;;  %v432_v44 = vsel %vm422_vm5, %v3896_v21, %v431_v39 }
 0x18c   : > { %v306_v40 = vsel %vm296_vm3, %v3892_v0, %v305_v33  ;;  %v309_v12 = vsel %vm296_vm3, %v307_v20, %v3897_v13  ;;  %v3179_v1 = vmul.f32 %v3110_v58, %v2850_v43  ;;  %v1409_v39 = vsel %vm359_vm4, %v1406_v50, %v1408_v37 }
 0x18d   : > { %v3144_v0 = vpop.permute.xlu1 %788  ;;  %v3146_v33 = vpop.permute.xlu0 %852  ;;  %v328_v9 = vadd.f32 %v306_v40, %v257_v49  ;;  %v404_v40 = vmul.f32 %v3106_v34, %v2850_v43  ;;  %v1412_v20 = vsel %vm359_vm4, %v1410_v56, %v1411_v61  ;;  %v1455_v21 = vmul.f32 %v3049_v28, %v3031_v60 }
 0x18e   : > { %3893 = vst [vmem:[#allocation48_spill] sm:$0xff] %v3144_v0  ;;  %3894 = vst [vmem:[#allocation49_spill] sm:$0xff] %v3146_v33  ;;  %v1385_v0 = vmul.f32 %v3155_v3, %v2918_v63  ;;  %v369_v33 = vsel %vm359_vm4, %v3895_v16, %v368_v53  ;;  %v1416_v16 = vrot.slane %v1386_v29, 2  ;;  %v3197_v50 = vmul.f32 %v3106_v34, %v2858_v45 }
 0x18f   : > { %1422 = vrot.lane.b32.xlu1 %v1404_v14, %s2335_s30  ;;  %1424 = vrot.lane.b32.xlu0 %v1407_v62, %s2335_s30  ;;  %v1413_v14 = vrot.slane %v1384_v23, 2  ;;  %v3187_v62 = vld [vmem:[#allocation2 + $0x58] sm:$0xf]  ;;  %v391_v26 = vadd.f32 %v369_v33, %v328_v9  ;;  %v1454_v33 = vmul.f32 %v3072_v41, %v3031_v60  ;;  %v3900_v56 = vrot.slane %v3142_v11, 2 }
 0x190   : > { %v1387_v13 = vmul.f32 %v3187_v62, %v2918_v63  ;;  %v1415_v48 = vrot.slane %v1385_v0, 2  ;;  %v433_v63 = vrot.slane %v404_v40, 3  ;;  %v280_v0 = vmul.f32 %v3149_v8, %v2818_v2 }
 0x191   : > { %v3182_v49 = vpop.permute.xlu1 %854  ;;  %v3184_v53 = vpop.permute.xlu0 %856  ;;  %v1456_v9 = vmul.f32 %v3083_v27, %v3031_v60  ;;  %v1457_v40 = vmul.f32 %v3002_v15, %v3031_v60  ;;  %v1479_v5 = vrot.slane %v1455_v21, 3  ;;  %v1458_v37 = vmul.f32 %v3053_v55, %v3031_v60 }
 0x192   : > { %3898 = vst [vmem:[#allocation50_spill] sm:$0xff] %v3182_v49  ;;  %3899 = vst [vmem:[#allocation51_spill] sm:$0xff] %v3184_v53  ;;  %v329_v49 = vadd.f32 %v309_v12, %v258_v31  ;;  %v372_v12 = vsel %vm359_vm4, %v370_v10, %v3900_v56  ;;  %v1418_v29 = vrot.slane %v1387_v13, 2  ;;  %v3221_v10 = vadd.f32 %v432_v44, %v391_v26 }
 0x193   : > { %1426 = vrot.lane.b32.xlu1 %v1409_v39, %s2335_s30  ;;  %1428 = vrot.lane.b32.xlu0 %v1412_v20, %s2335_s30  ;;  %v1414_v39 = vsel %vm359_vm4, %v1411_v61, %v1413_v14  ;;  %v1417_v20 = vsel %vm359_vm4, %v1415_v48, %v1416_v16  ;;  %v3225_v56 = vmul.f32 %v3110_v58, %v2858_v45  ;;  %v3903_v14 = vrot.slane %v3179_v1, 3 }
 0x194   : > { %v3232_v61 = vadd.f32 %v372_v12, %v329_v49  ;;  %v310_v44 = vrot.slane %v280_v0, 1  ;;  %v1478_v48 = vrot.slane %v1454_v33, 3  ;;  %v1419_v13 = vsel %vm359_vm4, %v1416_v16, %v1418_v29 }
 0x195   : > { %v3209_v31 = vpop.permute.xlu1 %858  ;;  %v3211_v23 = vpop.permute.xlu0 %860  ;;  %v3237_v26 = vsel %vm422_vm5, %v433_v63, %v3903_v14  ;;  %v1481_v53 = vrot.slane %v1456_v9, 3  ;;  %v1483_v54 = vrot.slane %v1457_v40, 3  ;;  %v1484_v12 = vrot.slane %v1458_v37, 3 }
 0x196   : > { %3901 = vst [vmem:[#allocation52_spill] sm:$0xff] %v3209_v31  ;;  %3902 = vst [vmem:[#allocation53_spill] sm:$0xff] %v3211_v23  ;;  %v343_v23 = vmul.f32 %v3149_v8, %v2848_v42  ;;  %v1480_v49 = vsel %vm422_vm5, %v1478_v48, %v1479_v5  ;;  %v1460_v63 = vmul.f32 %v3106_v34, %v3031_v60  ;;  %v3906_v37 = vrot.slane %v3114_v52, 1 }
 0x197   : > { %1430 = vrot.lane.b32.xlu1 %v1414_v39, %s2335_s30  ;;  %1432 = vrot.lane.b32.xlu0 %v1417_v20, %s2335_s30  ;;  %v1459_v39 = vmul.f32 %v3094_v24, %v3031_v60  ;;  %v1461_v0 = vmul.f32 %v3110_v58, %v3031_v60  ;;  %v259_v33 = vmul.f32 %v3110_v58, %v2846_v38 }
 0x198   : > { %v373_v20 = vrot.slane %v343_v23, 2  ;;  %v3255_v16 = vmul.f32 %v3149_v8, %v2850_v43  ;;  %v3259_v29 = vmul.f32 %v3149_v8, %v2858_v45  ;;  %v311_v9 = vsel %vm296_vm3, %v3906_v37, %v310_v44 }
 0x199   : > { %v3239_v21 = vpop.permute.xlu1 %862  ;;  %v3241_v31 = vpop.permute.xlu0 %864  ;;  %v260_v40 = vmul.f32 %v3155_v3, %v2846_v38  ;;  %v281_v23 = vmul.f32 %v3155_v3, %v2818_v2  ;;  %v282_v14 = vmul.f32 %v3159_v4, %v2818_v2  ;;  %v1462_v52 = vmul.f32 %v3149_v8, %v3031_v60 }
 0x19a   : > { %3904 = vst [vmem:[#allocation54_spill] sm:$0xff] %v3239_v21  ;;  %3905 = vst [vmem:[#allocation55_spill] sm:$0xff] %v3241_v31  ;;  %v1463_v44 = vmul.f32 %v3155_v3, %v3031_v60  ;;  %v1485_v37 = vsel %vm422_vm5, %v1483_v54, %v1484_v12  ;;  %v1488_v31 = vrot.slane %v1460_v63, 3  ;;  %v1489_v51 = vrot.slane %v1461_v0, 3 }
 0x19b   : > { %1434 = vrot.lane.b32.xlu1 %v1419_v13, %s2335_s30  ;;  %1498 = vrot.lane.b32.xlu0 %v1480_v49, %s2335_s30  ;;  %v1482_v13 = vsel %vm422_vm5, %v1479_v5, %v1481_v53  ;;  %v1486_v49 = vrot.slane %v1459_v39, 3  ;;  %v1464_v57 = vmul.f32 %v3159_v4, %v3031_v60  ;;  %v344_v53 = vmul.f32 %v3155_v3, %v2848_v42 }
 0x19c   : > { %v3294_v39 = vmul.f32 %v3159_v4, %v2848_v42  ;;  %v3298_v54 = vadd.f32 %v311_v9, %v259_v33  ;;  %v312_v63 = vrot.slane %v281_v23, 1  ;;  %v313_v0 = vrot.slane %v282_v14, 1 }
 0x19d   : > { %v3272_v48 = vpop.permute.xlu1 %866  ;;  %v3274_v21 = vpop.permute.xlu0 %980  ;;  %v1487_v46 = vsel %vm422_vm5, %v1484_v12, %v1486_v49  ;;  %v1491_v36 = vrot.slane %v1462_v52, 3  ;;  %v1490_v33 = vsel %vm422_vm5, %v1488_v31, %v1489_v51  ;;  %v1493_v9 = vrot.slane %v1463_v44, 3 }
 0x19e   : > { %3907 = vst [vmem:[#allocation56_spill] sm:$0xff] %v3272_v48  ;;  %3908 = vst [vmem:[#allocation57_spill] sm:$0xff] %v3274_v21  ;;  %v3909_v21 = vrot.slane %v3142_v11, 2  ;;  %v283_v11 = vmul.f32 %v3187_v62, %v2818_v2  ;;  %v1494_v23 = vrot.slane %v1464_v57, 3  ;;  %v1533_v2 = vmul.f32 %v3049_v28, %v3064_v6 }
 0x19f   : > { %1500 = vrot.lane.b32.xlu1 %v1482_v13, %s2335_s30  ;;  %1502 = vrot.lane.b32.xlu0 %v1485_v37, %s2335_s30  ;;  %v1465_v13 = vmul.f32 %v3187_v62, %v3031_v60  ;;  %v375_v14 = vrot.slane %v344_v53, 2  ;;  %v376_v37 = vrot.slane %v3294_v39, 2  ;;  %v3321_v12 = vmul.f32 %v3155_v3, %v2858_v45 }
 0x1a0   : > { %v3288_v5 = vsel %vm359_vm4, %v3909_v21, %v373_v20  ;;  %v407_v21 = vmul.f32 %v3155_v3, %v2850_v43  ;;  %v314_v57 = vsel %vm296_vm3, %v312_v63, %v313_v0  ;;  %v315_v60 = vrot.slane %v283_v11, 1 }
 0x1a1   : > { %v3304_v20 = vpop.permute.xlu1 %982  ;;  %v3306_v48 = vpop.permute.xlu0 %984  ;;  %v346_v31 = vmul.f32 %v3187_v62, %v2848_v42  ;;  %v1532_v49 = vmul.f32 %v3072_v41, %v3064_v6  ;;  %v1496_v39 = vrot.slane %v1465_v13, 3  ;;  %v1492_v63 = vsel %vm422_vm5, %v1489_v51, %v1491_v36 }
 0x1a2   : > { %3910 = vst [vmem:[#allocation58_spill] sm:$0xff] %v3304_v20  ;;  %3911 = vst [vmem:[#allocation59_spill] sm:$0xff] %v3306_v48  ;;  %v3317_v20 = vmul.f32 %v3159_v4, %v2850_v43  ;;  %v438_v52 = vrot.slane %v407_v21, 3  ;;  %v1495_v11 = vsel %vm422_vm5, %v1493_v9, %v1494_v23  ;;  %v1557_v42 = vrot.slane %v1533_v2, 4 }
 0x1a3   : > { %1504 = vrot.lane.b32.xlu1 %v1487_v46, %s2335_s30  ;;  %1506 = vrot.lane.b32.xlu0 %v1490_v33, %s2335_s30  ;;  %v1534_v46 = vmul.f32 %v3083_v27, %v3064_v6  ;;  %v1535_v33 = vmul.f32 %v3002_v15, %v3064_v6  ;;  %v1536_v48 = vmul.f32 %v3053_v55, %v3064_v6  ;;  %v378_v51 = vrot.slane %v346_v31, 2 }
 0x1a4   : > { %v331_v21 = vadd.f32 %v314_v57, %v260_v40  ;;  %v261_v13 = vmul.f32 %v3159_v4, %v2846_v38  ;;  %v316_v36 = vsel %vm296_vm3, %v313_v0, %v315_v60  ;;  %v409_v9 = vmul.f32 %v3187_v62, %v2850_v43 }
 0x1a5   : > { %v3330_v44 = vpop.permute.xlu1 %986  ;;  %v3332_v53 = vpop.permute.xlu0 %988  ;;  %v1556_v2 = vrot.slane %v1532_v49, 4  ;;  %v1561_v57 = vrot.slane %v1535_v33, 4  ;;  %v1537_v38 = vmul.f32 %v3094_v24, %v3064_v6  ;;  %v1538_v0 = vmul.f32 %v3106_v34, %v3064_v6 }
 0x1a6   : > { %3912 = vst [vmem:[#allocation60_spill] sm:$0xff] %v3330_v44  ;;  %3913 = vst [vmem:[#allocation61_spill] sm:$0xff] %v3332_v53  ;;  %v377_v44 = vsel %vm359_vm4, %v375_v14, %v376_v37  ;;  %v439_v53 = vrot.slane %v3317_v20, 3  ;;  %v1497_v20 = vsel %vm422_vm5, %v1494_v23, %v1496_v39  ;;  %v1559_v14 = vrot.slane %v1534_v46, 4 }
 0x1a7   : > { %1508 = vrot.lane.b32.xlu1 %v1492_v63, %s2335_s30  ;;  %1510 = vrot.lane.b32.xlu0 %v1495_v11, %s2335_s30  ;;  %v1558_v63 = vsel %vm485_vm6, %v1556_v2, %v1557_v42  ;;  %v1562_v11 = vrot.slane %v1536_v48, 4  ;;  %v3363_v43 = vmul.f32 %v3110_v58, %v3064_v6  ;;  %v436_v60 = vrot.slane %v3255_v16, 3 }
 0x1a8   : > { %v394_v31 = vadd.f32 %v377_v44, %v331_v21  ;;  %v471_v23 = vmul.f32 %v3159_v4, %v2858_v45  ;;  %v332_v49 = vadd.f32 %v316_v36, %v261_v13  ;;  %v440_v48 = vsel %vm422_vm5, %v438_v52, %v439_v53 }
 0x1a9   : > { %v3351_v27 = vpop.permute.xlu1 %990  ;;  %v3353_v40 = vpop.permute.xlu0 %992  ;;  %v379_v39 = vsel %vm359_vm4, %v376_v37, %v378_v51  ;;  %v441_v46 = vrot.slane %v409_v9, 3  ;;  %v472_v33 = vmul.f32 %v3187_v62, %v2858_v45  ;;  %v1560_v21 = vsel %vm485_vm6, %v1557_v42, %v1559_v14 }
 0x1aa   : > { %v1564_v13 = vrot.slane %v1537_v38, 4  ;;  %v1540_v36 = vmul.f32 %v3149_v8, %v3064_v6  ;;  %v1541_v2 = vmul.f32 %v3155_v3, %v3064_v6  ;;  %v1563_v52 = vsel %vm485_vm6, %v1561_v57, %v1562_v11 }
 0x1ab   : > { %1512 = vrot.lane.b32.xlu1 %v1497_v20, %s2335_s30  ;;  %1576 = vrot.lane.b32.xlu0 %v1558_v63, %s2335_s30  ;;  %v1566_v37 = vrot.slane %v1538_v0, 4  ;;  %v1567_v51 = vrot.slane %v3363_v43, 4  ;;  %v1542_v45 = vmul.f32 %v3159_v4, %v3064_v6  ;;  %v455_v9 = vadd.f32 %v3237_v26, %v3232_v61 }
 0x1ac   : > { %v393_v42 = vadd.f32 %v3288_v5, %v3298_v54  ;;  %v499_v20 = vrot.slane %v3259_v29, 4  ;;  %v395_v14 = vadd.f32 %v379_v39, %v332_v49  ;;  %v3914_v57 = vrot.slane %v3179_v1, 3 }
 0x1ad   : > { %v3376_v16 = vpop.permute.xlu1 %994  ;;  %v3378_v44 = vpop.permute.xlu0 %1058  ;;  %v501_v63 = vrot.slane %v3321_v12, 4  ;;  %v502_v0 = vrot.slane %v471_v23, 4  ;;  %v442_v61 = vsel %vm422_vm5, %v439_v53, %v441_v46  ;;  %v457_v26 = vadd.f32 %v440_v48, %v394_v31 }
 0x1ae   : > { %v437_v38 = vsel %vm422_vm5, %v3914_v57, %v436_v60  ;;  %v504_v5 = vrot.slane %v472_v33, 4  ;;  %v1565_v43 = vsel %vm485_vm6, %v1562_v11, %v1564_v13  ;;  %v1569_v49 = vrot.slane %v1540_v36, 4 }
 0x1af   : > { %1578 = vrot.lane.b32.xlu1 %v1560_v21, %s2335_s30  ;;  %1580 = vrot.lane.b32.xlu0 %v1563_v52, %s2335_s30  ;;  %v1568_v39 = vsel %vm485_vm6, %v1566_v37, %v1567_v51  ;;  %v1571_v1 = vrot.slane %v1541_v2, 4  ;;  %v1572_v21 = vrot.slane %v1542_v45, 4  ;;  %v1543_v12 = vmul.f32 %v3187_v62, %v3064_v6 }
 0x1b0   : > { %v3915_v60 = vrot.slane %v3057_v22, 4  ;;  %v3916_v53 = vrot.slane %v3036_v32, 4  ;;  %v456_v23 = vadd.f32 %v437_v38, %v393_v42  ;;  %v458_v48 = vadd.f32 %v442_v61, %v395_v14 }
 0x1b1   : > { %v3403_v29 = vpop.permute.xlu1 %1060  ;;  %v3405_v54 = vpop.permute.xlu0 %1062  ;;  %v1609_v11 = vstv %s3370_s6  ;;  %v3917_v33 = vrot.slane %v3104_v17, 4  ;;  %v3919_v32 = vrot.slane %v3225_v56, 4  ;;  %v3920_v36 = vrot.slane %v3197_v50, 4 }
 0x1b2   : > { %v493_v31 = vsel %vm485_vm6, %v3916_v53, %v3915_v60  ;;  %v3918_v6 = vmov %v3915_v60  ;;  %v503_v52 = vsel %vm485_vm6, %v501_v63, %v502_v0  ;;  %v505_v57 = vsel %vm485_vm6, %v502_v0, %v504_v5  ;;  %v3922_v5 = vld [vmem:[#allocation12_spill] sm:$0xff] }
 0x1b3   : > { %1582 = vrot.lane.b32.xlu1 %v1565_v43, %s2335_s30  ;;  %1584 = vrot.lane.b32.xlu0 %v1568_v39, %s2335_s30  ;;  %v516_v46 = vadd.f32 %v493_v31, %v3092_v30  ;;  %v495_v13 = vsel %vm485_vm6, %v3918_v6, %v3917_v33  ;;  %v498_v2 = vsel %vm485_vm6, %v3920_v36, %v3919_v32  ;;  %v1574_v63 = vrot.slane %v1543_v12, 4  ;;  %v3927_v33 = vld [vmem:[#allocation37_spill] sm:$0xff] }
 0x1b4   : > { %v517_v37 = vadd.f32 %v495_v13, %v3221_v10  ;;  %v518_v45 = vadd.f32 %v498_v2, %v455_v9  ;;  %v3921_v30 = vmov %v3919_v32  ;;  %v520_v42 = vadd.f32 %v503_v52, %v457_v26 }
 0x1b5   : > { %v500_v17 = vsel %vm485_vm6, %v3921_v30, %v499_v20  ;;  %v3437_v22 = vpop.permute.xlu1 %1064  ;;  %v3439_v14 = vpop.permute.xlu0 %1066  ;;  %v1570_v50 = vsel %vm485_vm6, %v1567_v51, %v1569_v49  ;;  %v1573_v38 = vsel %vm485_vm6, %v1571_v1, %v1572_v21  ;;  %v564_v10 = vadd.f32 %v2721_v7, %v3023_v25  ;;  %v3923_v7 = vld [vmem:[#allocation13_spill] sm:$0xff]  ;;  %v3924_v49 = vld [vmem:[#allocation14_spill] sm:$0xff] }
 0x1b6   : > { %v519_v9 = vadd.f32 %v500_v17, %v456_v23  ;;  %v521_v61 = vadd.f32 %v505_v57, %v458_v48  ;;  %v3449_v56 = vstv %s3396_s7  ;;  %v565_v20 = vadd.f32 %v2730_v18, %v3066_v59  ;;  %v3925_v59 = vld [vmem:[#allocation29_spill] sm:$0xff] }
 0x1b7   : > { %1586 = vrot.lane.b32.xlu1 %v1570_v50, %s2335_s30  ;;  %1588 = vrot.lane.b32.xlu0 %v1573_v38, %s2335_s30  ;;  %v566_v0 = vadd.f32 %v2732_v19, %v516_v46  ;;  %v567_v51 = vadd.f32 %v2741_v35, %v517_v37  ;;  %v570_v26 = vadd.f32 %v2754_v47, %v520_v42  ;;  %v3477_v48 = vstv %s3419_s24  ;;  %v3926_v46 = vld [vmem:[#allocation23_spill] sm:$0xff]  ;;  %v3929_v42 = vld [vmem:[#allocation30_spill] sm:$0xff] }
 0x1b8   : > { %v568_v43 = vadd.f32 %v3922_v5, %v518_v45  ;;  %v3458_v25 = vadd.f32 %v3923_v7, %v519_v9  ;;  %v571_v39 = vadd.f32 %v3924_v49, %v521_v61  ;;  %v1610_v18 = vmul.f32 %v3072_v41, %v1609_v11  ;;  %v3928_v45 = vld [vmem:[#allocation44_spill] sm:$0xff]  ;;  %v3930_v50 = vld [vmem:[#allocation31_spill] sm:$0xff]  ;;  %v3933_v49 = vld [vmem:[#allocation25_spill] sm:$0xff] }
 0x1b9   : > { %v3461_v1 = vpop.permute.xlu1 %1068  ;;  %v3463_v12 = vpop.permute.xlu0 %1070  ;;  %v648_v19 = vadd.f32 %v3925_v59, %v570_v26  ;;  %v1575_v35 = vsel %vm485_vm6, %v1572_v21, %v1574_v63  ;;  %v1611_v47 = vmul.f32 %v3049_v28, %v1609_v11  ;;  %v1612_v60 = vmul.f32 %v3002_v15, %v1609_v11  ;;  %v3931_v63 = vld [vmem:[#allocation47_spill] sm:$0xff] }
 0x1ba   : > { %v1613_v53 = vmul.f32 %v3053_v55, %v1609_v11  ;;  %v1614_v31 = vmul.f32 %v3106_v34, %v1609_v11  ;;  %v1660_v23 = vmul.f32 %v3072_v41, %v3449_v56  ;;  %v642_v21 = vadd.f32 %v3926_v46, %v564_v10 }
 0x1bb   : > { %1590 = vrot.lane.b32.xlu1 %v1575_v35, %s2335_s30  ;;  %1626 = vrot.lane.b32.xlu0 %v1610_v18, %s2336_s27  ;;  %v726_v6 = vadd.f32 %v3927_v33, %v648_v19  ;;  %v1615_v13 = vmul.f32 %v3110_v58, %v1609_v11  ;;  %v1616_v32 = vmul.f32 %v3155_v3, %v1609_v11  ;;  %v3934_v18 = vld [vmem:[#allocation38_spill] sm:$0xff]  ;;  %v3935_v19 = vld [vmem:[#allocation39_spill] sm:$0xff]  ;;  %s2261_s30 = scalar_lea.vmem %s2260_s29, 2048 }
 0x1bc   : > { %v3488_v52 = vmul.f32 %v3159_v4, %v1609_v11  ;;  %v1661_v37 = vmul.f32 %v3049_v28, %v3449_v56  ;;  %v1662_v30 = vmul.f32 %v3928_v45, %v3449_v56  ;;  %v1663_v17 = vmul.f32 %v3002_v15, %v3449_v56  ;;  %v3932_v11 = vld [vmem:[#allocation24_spill] sm:$0xff]  ;;  %p2263_p4 = scmp.lt.s32.totalorder %s2261_s30, %s2255_s20 }
 0x1bd   : > { %v3483_v36 = vpop.permute.xlu1 %1072  ;;  %v3485_v2 = vpop.permute.xlu0 %1136  ;;  %v649_v57 = vadd.f32 %v3929_v42, %v571_v39  ;;  %v720_v38 = vadd.f32 %v3930_v50, %v642_v21  ;;  %v804_v10 = vadd.f32 %v3931_v63, %v726_v6  ;;  %v3501_v9 = vmul.f32 %v3053_v55, %v3449_v56  ;;  %v3938_v50 = vld [vmem:[#allocation33_spill] sm:$0xff] }
 0x1be   : > { %v643_v61 = vadd.f32 %v3932_v11, %v565_v20  ;;  %v1684_v26 = vrot.slane %v1660_v23, 1  ;;  %v3508_v5 = vmul.f32 %v3094_v24, %v3449_v56  ;;  %v3512_v7 = vmul.f32 %v3106_v34, %v3449_v56  ;;  %v3936_v20 = vld [vmem:[#allocation55_spill] sm:$0xff]  ;;  %v3939_v11 = vld [vmem:[#allocation48_spill] sm:$0xff]  ;;  %p2264_p5 = por %p2263_p4, %p2262_p6 }
 0x1bf   : > { %1628 = vrot.lane.b32.xlu1 %v1611_v47, %s2336_s27  ;;  %1630 = vrot.lane.b32.xlu0 %v1612_v60, %s2336_s27  ;;  %v644_v39 = vadd.f32 %v3933_v49, %v566_v0  ;;  %v727_v59 = vadd.f32 %v3934_v18, %v649_v57  ;;  %v798_v35 = vadd.f32 %v3935_v19, %v720_v38  ;;  %v3937_v47 = vld [vmem:[#allocation32_spill] sm:$0xff]  ;;  %v1685_v33 = vrot.slane %v1661_v37, 1  ;;  %v3940_v0 = vld [vmem:[#allocation49_spill] sm:$0xff]  ;;  %v3941_v38 = vld [vmem:[#allocation26_spill] sm:$0xff] }
 0x1c0   : > { %v882_v46 = vadd.f32 %v3936_v20, %v804_v10  ;;  %v721_v21 = vadd.f32 %v3937_v47, %v643_v61  ;;  %v1687_v6 = vrot.slane %v1662_v30, 1  ;;  %v1689_v42 = vrot.slane %v1663_v17, 1  ;;  %v3942_v61 = vld [vmem:[#allocation27_spill] sm:$0xff]  ;;  %v3943_v19 = vld [vmem:[#allocation40_spill] sm:$0xff]  ;;  %v3944_v30 = vld [vmem:[#allocation41_spill] sm:$0xff]  ;;  %p2265_p0 = pnand %p2264_p5, %p2258_p3 }
 0x1c1   : > { %v3519_v60 = vpop.permute.xlu1 %1138  ;;  %v3521_v23 = vpop.permute.xlu0 %1140  ;;  %v722_v63 = vadd.f32 %v3938_v50, %v644_v39  ;;  %v805_v34 = vadd.f32 %v3939_v11, %v727_v59  ;;  %v876_v49 = vadd.f32 %v3940_v0, %v798_v35  ;;  %v3528_v57 = vmul.f32 %v3110_v58, %v3449_v56  ;;  %v3945_v39 = vld [vmem:[#allocation56_spill] sm:$0xff]  ;;  %v3946_v35 = vld [vmem:[#allocation21_spill] sm:$0xff]  ;;  %v3947_v11 = vld [vmem:[#allocation34_spill] sm:$0xff] }
 0x1c2   : > { %v645_v10 = vadd.f32 %v3941_v38, %v567_v51  ;;  %v646_v18 = vadd.f32 %v3942_v61, %v568_v43  ;;  %v799_v20 = vadd.f32 %v3943_v19, %v721_v21  ;;  %v1690_v37 = vrot.slane %v3501_v9, 1  ;;  %v3948_v0 = vld [vmem:[#allocation35_spill] sm:$0xff]  ;;  %v3949_v38 = vld [vmem:[#allocation50_spill] sm:$0xff] }
 0x1c3   : > { %1632 = vrot.lane.b32.xlu1 %v1613_v53, %s2336_s27  ;;  %1634 = vrot.lane.b32.xlu0 %v1614_v31, %s2336_s27  ;;  %v800_v17 = vadd.f32 %v3944_v30, %v722_v63  ;;  %v883_v59 = vadd.f32 %v3945_v39, %v805_v34  ;;  %v932_v47 = vadd.f32 %v3946_v35, %v882_v46  ;;  %v1692_v50 = vrot.slane %v3508_v5, 1  ;;  %v3950_v9 = vld [vmem:[#allocation51_spill] sm:$0xff] }
 0x1c4   : > { %v723_v51 = vadd.f32 %v3947_v11, %v645_v10  ;;  %v724_v43 = vadd.f32 %v3948_v0, %v646_v18  ;;  %v877_v21 = vadd.f32 %v3949_v38, %v799_v20  ;;  %v1686_v31 = vsel %vm296_vm3, %v1684_v26, %v1685_v33  ;;  %v3951_v19 = vld [vmem:[#allocation15_spill] sm:$0xff]  ;;  %v3952_v10 = vld [vmem:[#allocation28_spill] sm:$0xff]  ;;  %v3953_v18 = vld [vmem:[#allocation42_spill] sm:$0xff] }
 0x1c5   : > { %v3543_v61 = vpop.permute.xlu1 %1142  ;;  %v3545_v53 = vpop.permute.xlu0 %1144  ;;  %v878_v63 = vadd.f32 %v3950_v9, %v800_v17  ;;  %v926_v34 = vadd.f32 %v3951_v19, %v876_v49  ;;  %v1010_v46 = vadd.f32 %v3353_v40, %v932_v47  ;;  %v1688_v5 = vsel %vm296_vm3, %v1685_v33, %v1687_v6  ;;  %v3954_v20 = vld [vmem:[#allocation43_spill] sm:$0xff]  ;;  %v3955_v17 = vld [vmem:[#allocation57_spill] sm:$0xff]  ;;  %v3956_v49 = vld [vmem:[#allocation22_spill] sm:$0xff] }
 0x1c6   : > { %v647_v30 = vadd.f32 %v3952_v10, %v3458_v25  ;;  %v801_v39 = vadd.f32 %v3953_v18, %v723_v51  ;;  %v802_v35 = vadd.f32 %v3954_v20, %v724_v43  ;;  %v1694_v26 = vrot.slane %v3512_v7, 1  ;;  %v3957_v6 = vld [vmem:[#allocation36_spill] sm:$0xff]  ;;  %v3959_v38 = vld [vmem:[#allocation53_spill] sm:$0xff] }
 0x1c7   : > { %1636 = vrot.lane.b32.xlu1 %v1615_v13, %s2336_s27  ;;  %1638 = vrot.lane.b32.xlu0 %v1616_v32, %s2336_s27  ;;  %v1004_v11 = vadd.f32 %v3955_v17, %v926_v34  ;;  %v933_v0 = vadd.f32 %v3956_v49, %v883_v59  ;;  %v1088_v40 = vadd.f32 %v3463_v12, %v1010_v46  ;;  %v3958_v47 = vld [vmem:[#allocation52_spill] sm:$0xff]  ;;  %v3961_v7 = vld [vmem:[#allocation17_spill] sm:$0xff]  ;;  %v3965_v17 = vld [vmem:[#allocation54_spill] sm:$0xff] }
 0x1c8   : > { %v1691_v33 = vsel %vm296_vm3, %v1689_v42, %v1690_v37  ;;  %v725_v25 = vadd.f32 %v3957_v6, %v647_v30  ;;  %v879_v51 = vadd.f32 %v3958_v47, %v801_v39  ;;  %v880_v43 = vadd.f32 %v3959_v38, %v802_v35  ;;  %v3960_v9 = vld [vmem:[#allocation16_spill] sm:$0xff]  ;;  %v3962_v42 = vld [vmem:[#allocation46_spill] sm:$0xff]  ;;  %v3967_v49 = vld [vmem:[#allocation19_spill] sm:$0xff] }
 0x1c9   : > { %v927_v13 = vadd.f32 %v3960_v9, %v877_v21  ;;  %v3567_v19 = vpop.permute.xlu1 %1146  ;;  %v1149_v32 = vpop.permute.xlu0 %1148  ;;  %v928_v10 = vadd.f32 %v3961_v7, %v878_v63  ;;  %v1011_v34 = vadd.f32 %v3376_v16, %v933_v0  ;;  %v1082_v59 = vadd.f32 %v3378_v44, %v1004_v11  ;;  %v3963_v16 = vld [vmem:[#allocation58_spill] sm:$0xff]  ;;  %v3964_v44 = vld [vmem:[#allocation59_spill] sm:$0xff] }
 0x1ca   : > { %v3572_v12 = vadd.f32 %v1149_v32, %v1088_v40  ;;  %v803_v46 = vadd.f32 %v3962_v42, %v725_v25  ;;  %v1695_v21 = vrot.slane %v3528_v57, 1  ;;  %v1668_v30 = vmul.f32 %v3149_v8, %v3449_v56  ;;  %v3966_v11 = vld [vmem:[#allocation18_spill] sm:$0xff]  ;;  %v3969_v32 = vld [vmem:[#allocation61_spill] sm:$0xff] }
 0x1cb   : > { %1640 = vrot.lane.b32.xlu1 %v3488_v52, %s2336_s27  ;;  %1704 = vrot.lane.b32.xlu0 %v1686_v31, %s2336_s27  ;;  %v1669_v63 = vmul.f32 %v3155_v3, %v3449_v56  ;;  %v1005_v18 = vadd.f32 %v3963_v16, %v927_v13  ;;  %v1006_v39 = vadd.f32 %v3964_v44, %v928_v10  ;;  %v3968_v13 = vld [vmem:[#allocation60_spill] sm:$0xff] }
 0x1cc   : > { %v1089_v20 = vadd.f32 %v3483_v36, %v1011_v34  ;;  %v1160_v35 = vadd.f32 %v3485_v2, %v1082_v59  ;;  %v881_v52 = vadd.f32 %v3965_v17, %v803_v46  ;;  %v929_v31 = vadd.f32 %v3966_v11, %v879_v51  ;;  %v3970_v34 = vld [vmem:[#allocation20_spill] sm:$0xff] }
 0x1cd   : > { %v930_v57 = vadd.f32 %v3967_v49, %v880_v43  ;;  %v1151_v0 = vpop.permute.xlu1 %1150  ;;  %v1215_v40 = vpop.permute.xlu0 %1214  ;;  %v1670_v6 = vmul.f32 %v3159_v4, %v3449_v56  ;;  %v1083_v25 = vadd.f32 %v3403_v29, %v1005_v18  ;;  %v1084_v47 = vadd.f32 %v3405_v54, %v1006_v39 }
 0x1ce   : > { %v3594_v38 = vadd.f32 %v1151_v0, %v1089_v20  ;;  %v3596_v36 = vadd.f32 %v1215_v40, %v1160_v35  ;;  %v1693_v2 = vsel %vm296_vm3, %v1690_v37, %v1692_v50  ;;  %v1696_v51 = vsel %vm296_vm3, %v1694_v26, %v1695_v21 }
 0x1cf   : > { %1706 = vrot.lane.b32.xlu1 %v1688_v5, %s2336_s27  ;;  %1708 = vrot.lane.b32.xlu0 %v1691_v33, %s2336_s27  ;;  %v1697_v43 = vrot.slane %v1668_v30, 1  ;;  %v1671_v9 = vmul.f32 %v3187_v62, %v3449_v56  ;;  %v1007_v29 = vadd.f32 %v3968_v13, %v929_v31  ;;  %v1008_v54 = vadd.f32 %v3969_v32, %v930_v57 }
 0x1d0   : > { %v1161_v7 = vadd.f32 %v3519_v60, %v1083_v25  ;;  %v1162_v10 = vadd.f32 %v3521_v23, %v1084_v47  ;;  %v931_v5 = vadd.f32 %v3970_v34, %v881_v52  ;;  %v1699_v42 = vrot.slane %v1669_v63, 1  ;;  %v3971_v25 = vld [vmem:[#allocation45_spill] sm:$0xff] }
 0x1d1   : > { %v1217_v59 = vpop.permute.xlu1 %1216  ;;  %v1219_v33 = vpop.permute.xlu0 %1218  ;;  %v1700_v37 = vrot.slane %v1670_v6, 1  ;;  %v1739_v50 = vmul.f32 %v3049_v28, %v3477_v48  ;;  %v1085_v26 = vadd.f32 %v3437_v22, %v1007_v29  ;;  %v1086_v56 = vadd.f32 %v3439_v14, %v1008_v54 }
 0x1d2   : > { %v1239_v46 = vadd.f32 %v1217_v59, %v1161_v7  ;;  %v1240_v30 = vadd.f32 %v1219_v33, %v1162_v10  ;;  %v1702_v60 = vrot.slane %v1671_v9, 1  ;;  %v1738_v23 = vmul.f32 %v3072_v41, %v3477_v48 }
 0x1d3   : > { %1710 = vrot.lane.b32.xlu1 %v1693_v2, %s2336_s27  ;;  %1712 = vrot.lane.b32.xlu0 %v1696_v51, %s2336_s27  ;;  %v1009_v63 = vadd.f32 %v3351_v27, %v931_v5  ;;  %v1163_v16 = vadd.f32 %v3543_v61, %v1085_v26  ;;  %v1164_v18 = vadd.f32 %v3545_v53, %v1086_v56  ;;  %v1763_v53 = vrot.slane %v1739_v50, 2 }
 0x1d4   : > { %v1740_v22 = vmul.f32 %v3928_v45, %v3477_v48  ;;  %v1698_v39 = vsel %vm296_vm3, %v1695_v21, %v1697_v43  ;;  %v1701_v20 = vsel %vm296_vm3, %v1699_v42, %v1700_v37  ;;  %v1741_v35 = vmul.f32 %v3002_v15, %v3477_v48 }
 0x1d5   : > { %v1221_v14 = vpop.permute.xlu1 %1220  ;;  %v1223_v44 = vpop.permute.xlu0 %1222  ;;  %v1742_v17 = vmul.f32 %v3053_v55, %v3477_v48  ;;  %v1087_v27 = vadd.f32 %v3461_v1, %v1009_v63  ;;  %v1762_v21 = vrot.slane %v1738_v23, 2  ;;  %v1743_v49 = vmul.f32 %v3094_v24, %v3477_v48 }
 0x1d6   : > { %v1241_v61 = vadd.f32 %v1221_v14, %v1163_v16  ;;  %v1242_v52 = vadd.f32 %v1223_v44, %v1164_v18  ;;  %v1765_v31 = vrot.slane %v1740_v22, 2  ;;  %v1703_v40 = vsel %vm296_vm3, %v1700_v37, %v1702_v60 }
 0x1d7   : > { %1714 = vrot.lane.b32.xlu1 %v1698_v39, %s2336_s27  ;;  %1716 = vrot.lane.b32.xlu0 %v1701_v20, %s2336_s27  ;;  %v1165_v11 = vadd.f32 %v3567_v19, %v1087_v27  ;;  %v1767_v1 = vrot.slane %v1741_v35, 2  ;;  %v1768_v6 = vrot.slane %v1742_v17, 2  ;;  %v1744_v47 = vmul.f32 %v3971_v25, %v3477_v48 }
 0x1d8   : > { %v1764_v19 = vsel %vm359_vm4, %v1762_v21, %v1763_v53  ;;  %v1745_v43 = vmul.f32 %v3110_v58, %v3477_v48  ;;  %v1766_v9 = vsel %vm359_vm4, %v1763_v53, %v1765_v31  ;;  %v1770_v13 = vrot.slane %v1743_v49, 2 }
 0x1d9   : > { %v1225_v57 = vpop.permute.xlu1 %1224  ;;  %v1227_v0 = vpop.permute.xlu0 %1226  ;;  %v1769_v54 = vsel %vm359_vm4, %v1767_v1, %v1768_v6  ;;  %v1772_v7 = vrot.slane %v1744_v47, 2  ;;  %v1747_v10 = vmul.f32 %v3155_v3, %v3477_v48  ;;  %v1748_v33 = vmul.f32 %v3159_v4, %v3477_v48 }
 0x1da   : > { %v1243_v2 = vadd.f32 %v1225_v57, %v1165_v11  ;;  %v1244_v51 = vadd.f32 %v1227_v0, %v3572_v12  ;;  %v1746_v12 = vmul.f32 %v3149_v8, %v3477_v48  ;;  %v1773_v59 = vrot.slane %v1745_v43, 2 }
 0x1db   : > { %1718 = vrot.lane.b32.xlu1 %v1703_v40, %s2336_s27  ;;  %1782 = vrot.lane.b32.xlu0 %v1764_v19, %s2336_s27  ;;  %v1749_v42 = vmul.f32 %v3187_v62, %v3477_v48  ;;  %v3657_v37 = vstv %s2113_s8  ;;  %v1771_v56 = vsel %vm359_vm4, %v1768_v6, %v1770_v13  ;;  %v1777_v60 = vrot.slane %v1747_v10, 2 }
 0x1dc   : > { %v1774_v16 = vsel %vm359_vm4, %v1772_v7, %v1773_v59  ;;  %v1778_v18 = vrot.slane %v1748_v33, 2  ;;  %v1816_v48 = vmul.f32 %v3072_v41, %v3657_v37  ;;  %v1818_v14 = vmul.f32 %v3928_v45, %v3657_v37 }
 0x1dd   : > { %v1229_v29 = vpop.permute.xlu1 %1228  ;;  %v1265_v32 = vpop.permute.xlu0 %1264  ;;  %v1780_v22 = vrot.slane %v1749_v42, 2  ;;  %v1820_v27 = vmul.f32 %v3053_v55, %v3657_v37  ;;  %v1822_v55 = vmul.f32 %v3971_v25, %v3657_v37  ;;  %v1823_v0 = vmul.f32 %v3110_v58, %v3657_v37 }
 0x1de   : > { %v1245_v34 = vadd.f32 %v1229_v29, %v3594_v38  ;;  %v1288_v5 = vadd.f32 %v1265_v32, %v3596_v36  ;;  %v1775_v38 = vrot.slane %v1746_v12, 2  ;;  %v1817_v36 = vmul.f32 %v3049_v28, %v3657_v37 }
 0x1df   : > { %1784 = vrot.lane.b32.xlu1 %v1766_v9, %s2336_s27  ;;  %1786 = vrot.lane.b32.xlu0 %v1769_v54, %s2336_s27  ;;  %v1779_v17 = vsel %vm359_vm4, %v1777_v60, %v1778_v18  ;;  %v1840_v41 = vrot.slane %v1816_v48, 3  ;;  %v1781_v45 = vsel %vm359_vm4, %v1778_v18, %v1780_v22  ;;  %v1843_v53 = vrot.slane %v1818_v14, 3  ;;  %v2207_v14 = vld [vmem:[#allocation2 + $0x18] sm:$0xff] }
 0x1e0   : > { %v1776_v28 = vsel %vm359_vm4, %v1773_v59, %v1775_v38  ;;  %v1846_v57 = vrot.slane %v1820_v27, 3  ;;  %v1850_v47 = vrot.slane %v1822_v55, 3  ;;  %v1851_v9 = vrot.slane %v1823_v0, 3  ;;  %v2206_v38 = vld [vmem:[#allocation2 + $0x10] sm:$0xf] }
 0x1e1   : > { %v1267_v50 = vpop.permute.xlu1 %1266  ;;  %v1269_v26 = vpop.permute.xlu0 %1268  ;;  %v3705_v29 = vstv %s2114_s14  ;;  %v1827_v10 = vmul.f32 %v3187_v62, %v3657_v37 }
 0x1e2   : > { %v1289_v23 = vadd.f32 %v1267_v50, %v1239_v46  ;;  %v1290_v63 = vadd.f32 %v1269_v26, %v1240_v30  ;;  %v1841_v46 = vrot.slane %v1817_v36, 3  ;;  %v1819_v30 = vmul.f32 %v3002_v15, %v3657_v37  ;;  %v2205_v26 = vld [vmem:[#allocation2] sm:$0xff] }
 0x1e3   : > { %1788 = vrot.lane.b32.xlu1 %v1771_v56, %s2336_s27  ;;  %1790 = vrot.lane.b32.xlu0 %v1774_v16, %s2336_s27  ;;  %v1852_v50 = vsel %vm422_vm5, %v1850_v47, %v1851_v9  ;;  %v1894_v56 = vmul.f32 %v2205_v26, %v3705_v29  ;;  %v1896_v60 = vmul.f32 %v2206_v38, %v3705_v29 }
 0x1e4   : > { %v1842_v15 = vsel %vm422_vm5, %v1840_v41, %v1841_v46  ;;  %v1844_v40 = vsel %vm422_vm5, %v1841_v46, %v1843_v53  ;;  %v2210_v53 = vld [vmem:[#allocation2 + $0x30] sm:$0xff]  ;;  %v1902_v47 = vmul.f32 %v3149_v8, %v3705_v29 }
 0x1e5   : > { %v1271_v44 = vpop.permute.xlu1 %1270  ;;  %v1273_v39 = vpop.permute.xlu0 %1272  ;;  %v1918_v46 = vrot.slane %v1894_v56, 4 }
 0x1e6   : > { %v1291_v20 = vadd.f32 %v1271_v44, %v1241_v61  ;;  %v1292_v35 = vadd.f32 %v1273_v39, %v1242_v52  ;;  %v1845_v61 = vrot.slane %v1819_v30, 3  ;;  %v1821_v52 = vmul.f32 %v3094_v24, %v3657_v37  ;;  %v2208_v39 = vld [vmem:[#allocation2 + $0x20] sm:$0xff] }
 0x1e7   : > { %1792 = vrot.lane.b32.xlu1 %v1776_v28, %s2336_s27  ;;  %1794 = vrot.lane.b32.xlu0 %v1779_v17, %s2336_s27  ;;  %v1824_v24 = vmul.f32 %v3149_v8, %v3657_v37  ;;  %v1897_v44 = vmul.f32 %v2207_v14, %v3705_v29  ;;  %v1898_v28 = vmul.f32 %v2208_v39, %v3705_v29  ;;  %v1921_v30 = vrot.slane %v1896_v60, 4  ;;  %v2209_v17 = vld [vmem:[#allocation2 + $0x28] sm:$0xf] }
 0x1e8   : > { %v1848_v25 = vrot.slane %v1821_v52, 3  ;;  %v1847_v43 = vsel %vm422_vm5, %v1845_v61, %v1846_v57  ;;  %v1899_v27 = vmul.f32 %v2209_v17, %v3705_v29 }
 0x1e9   : > { %v1275_v11 = vpop.permute.xlu1 %1274  ;;  %v1277_v21 = vpop.permute.xlu0 %1276  ;;  %v1853_v13 = vrot.slane %v1824_v24, 3  ;;  %v1923_v55 = vrot.slane %v1897_v44, 4 }
 0x1ea   : > { %v3683_v31 = vadd.f32 %v1275_v11, %v1243_v2  ;;  %v3685_v49 = vadd.f32 %v1277_v21, %v1244_v51  ;;  %v1825_v2 = vmul.f32 %v3155_v3, %v3657_v37  ;;  %v1826_v51 = vmul.f32 %v3159_v4, %v3657_v37  ;;  %v2211_v21 = vld [vmem:[#allocation2 + $0x38] sm:$0xff] }
 0x1eb   : > { %1796 = vrot.lane.b32.xlu1 %v1781_v45, %s2336_s27  ;;  %1860 = vrot.lane.b32.xlu0 %v1842_v15, %s2336_s27  ;;  %v1849_v42 = vsel %vm422_vm5, %v1846_v57, %v1848_v25  ;;  %v1854_v16 = vsel %vm422_vm5, %v1851_v9, %v1853_v13  ;;  %v1900_v11 = vmul.f32 %v2210_v53, %v3705_v29  ;;  %v1924_v57 = vrot.slane %v1898_v28, 4 }
 0x1ec   : > { %v1855_v7 = vrot.slane %v1825_v2, 3  ;;  %v1856_v12 = vrot.slane %v1826_v51, 3  ;;  %v1901_v15 = vmul.f32 %v2211_v21, %v3705_v29 }
 0x1ed   : > { %v1279_v1 = vpop.permute.xlu1 %1278  ;;  %v1343_v6 = vpop.permute.xlu0 %1342  ;;  %v1925_v51 = vsel %vm485_vm6, %v1923_v55, %v1924_v57 }
 0x1ee   : > { %v3698_v58 = vadd.f32 %v1279_v1, %v1245_v34  ;;  %v3700_v19 = vadd.f32 %v1343_v6, %v1288_v5  ;;  %v2204_v34 = vld [vmem:[#allocation2 + $0x8] sm:$0xff]  ;;  %v1928_v6 = vrot.slane %v1900_v11, 4  ;;  %v1929_v25 = vrot.slane %v1901_v15, 4 }
 0x1ef   : > { %1862 = vrot.lane.b32.xlu1 %v1844_v40, %s2336_s27  ;;  %1864 = vrot.lane.b32.xlu0 %v1847_v43, %s2336_s27  ;;  %v1895_v5 = vmul.f32 %v2204_v34, %v3705_v29  ;;  %v1926_v40 = vrot.slane %v1899_v27, 4  ;;  %v1904_v43 = vmul.f32 %v3159_v4, %v3705_v29 }
 0x1f1   : > { %v1345_v32 = vpop.permute.xlu1 %1344  ;;  %v1347_v54 = vpop.permute.xlu0 %1346  ;;  %v1919_v18 = vrot.slane %v1895_v5, 4  ;;  %v1927_v8 = vsel %vm485_vm6, %v1924_v57, %v1926_v40 }
 0x1f2   : > { %v1367_v59 = vadd.f32 %v1345_v32, %v1289_v23  ;;  %v1368_v33 = vadd.f32 %v1347_v54, %v1290_v63  ;;  %v1857_v23 = vsel %vm422_vm5, %v1855_v7, %v1856_v12  ;;  %v1858_v63 = vrot.slane %v1827_v10, 3 }
 0x1f3   : > { %1866 = vrot.lane.b32.xlu1 %v1849_v42, %s2336_s27  ;;  %1868 = vrot.lane.b32.xlu0 %v1852_v50, %s2336_s27  ;;  %v1922_v0 = vsel %vm485_vm6, %v1919_v18, %v1921_v30  ;;  %v1930_v32 = vsel %vm485_vm6, %v1928_v6, %v1929_v25 }
 0x1f5   : > { %v1349_v37 = vpop.permute.xlu1 %1348  ;;  %v1351_v36 = vpop.permute.xlu0 %1350 }
 0x1f6   : > { %v1369_v48 = vadd.f32 %v1349_v37, %v1291_v20  ;;  %v1370_v22 = vadd.f32 %v1351_v36, %v1292_v35  ;;  %v1859_v20 = vsel %vm422_vm5, %v1856_v12, %v1858_v63  ;;  %v1920_v35 = vsel %vm485_vm6, %v1918_v46, %v1919_v18 }
 0x1f7   : > { %1870 = vrot.lane.b32.xlu1 %v1854_v16, %s2336_s27  ;;  %1872 = vrot.lane.b32.xlu0 %v1857_v23, %s2336_s27  ;;  %v1934_v12 = vrot.slane %v1904_v43, 4 }
 0x1f9   : > { %v1353_v41 = vpop.permute.xlu1 %1352  ;;  %v1355_v45 = vpop.permute.xlu0 %1354 }
 0x1fa   : > { %v1371_v61 = vadd.f32 %v1353_v41, %v3683_v31  ;;  %v1372_v52 = vadd.f32 %v1355_v45, %v3685_v49  ;;  %v1903_v31 = vmul.f32 %v3155_v3, %v3705_v29  ;;  %v1931_v3 = vrot.slane %v1902_v47, 4 }
 0x1fb   : > { %1874 = vrot.lane.b32.xlu1 %v1859_v20, %s2336_s27  ;;  %1938 = vrot.lane.b32.xlu0 %v1920_v35, %s2336_s27 }
 0x1fc   : > { %v1933_v7 = vrot.slane %v1903_v31, 4  ;;  %v1932_v50 = vsel %vm485_vm6, %v1929_v25, %v1931_v3 }
 0x1fd   : > { %v1357_v24 = vpop.permute.xlu1 %1356  ;;  %v1421_v1 = vpop.permute.xlu0 %1420 }
 0x1fe   : > { %v1373_v49 = vadd.f32 %v1357_v24, %v3698_v58  ;;  %v1444_v2 = vadd.f32 %v1421_v1, %v3700_v19  ;;  %v1905_v58 = vmul.f32 %v3187_v62, %v3705_v29  ;;  %v1935_v26 = vsel %vm485_vm6, %v1933_v7, %v1934_v12 }
 0x1ff   : > { %1940 = vrot.lane.b32.xlu1 %v1922_v0, %s2336_s27  ;;  %1942 = vrot.lane.b32.xlu0 %v1925_v51, %s2336_s27 }
 0x200   : > { %v1936_v34 = vrot.slane %v1905_v58, 4 }
 0x201   : > { %v1423_v9 = vpop.permute.xlu1 %1422  ;;  %v1425_v13 = vpop.permute.xlu0 %1424 }
 0x202   : > { %v1445_v19 = vadd.f32 %v1423_v9, %v1367_v59  ;;  %v1446_v54 = vadd.f32 %v1425_v13, %v1368_v33  ;;  %v1937_v56 = vsel %vm485_vm6, %v1934_v12, %v1936_v34 }
 0x203   : > { %1944 = vrot.lane.b32.xlu1 %v1927_v8, %s2336_s27  ;;  %1946 = vrot.lane.b32.xlu0 %v1930_v32, %s2336_s27 }
 0x205   : > { %v1427_v4 = vpop.permute.xlu1 %1426  ;;  %v1429_v10 = vpop.permute.xlu0 %1428 }
 0x206   : > { %v1447_v5 = vadd.f32 %v1427_v4, %v1369_v48  ;;  %v1448_v42 = vadd.f32 %v1429_v10, %v1370_v22 }
 0x207   : > { %1948 = vrot.lane.b32.xlu1 %v1932_v50, %s2336_s27  ;;  %1950 = vrot.lane.b32.xlu0 %v1935_v26, %s2336_s27 }
 0x209   : > { %v1431_v62 = vpop.permute.xlu1 %1430  ;;  %v1433_v29 = vpop.permute.xlu0 %1432 }
 0x20a   : > { %v1449_v59 = vadd.f32 %v1431_v62, %v1371_v61  ;;  %v1450_v33 = vadd.f32 %v1433_v29, %v1372_v52 }
 0x20b   : > { %1952 = vrot.lane.b32.xlu1 %v1937_v56, %s2336_s27 }
 0x20d   : > { %v1435_v38 = vpop.permute.xlu1 %1434  ;;  %v1499_v60 = vpop.permute.xlu0 %1498 }
 0x20e   : > { %v1451_v37 = vadd.f32 %v1435_v38, %v1373_v49  ;;  %v1522_v36 = vadd.f32 %v1499_v60, %v1444_v2 }
 0x211   : > { %v1501_v16 = vpop.permute.xlu1 %1500  ;;  %v1503_v23 = vpop.permute.xlu0 %1502 }
 0x212   : > { %v1523_v63 = vadd.f32 %v1501_v16, %v1445_v19  ;;  %v1524_v18 = vadd.f32 %v1503_v23, %v1446_v54 }
 0x215   : > { %v1505_v48 = vpop.permute.xlu1 %1504  ;;  %v1507_v22 = vpop.permute.xlu0 %1506 }
 0x216   : > { %v1525_v14 = vadd.f32 %v1505_v48, %v1447_v5  ;;  %v1526_v44 = vadd.f32 %v1507_v22, %v1448_v42 }
 0x219   : > { %v1509_v39 = vpop.permute.xlu1 %1508  ;;  %v1511_v28 = vpop.permute.xlu0 %1510 }
 0x21a   : > { %v1527_v46 = vadd.f32 %v1509_v39, %v1449_v59  ;;  %v1528_v30 = vadd.f32 %v1511_v28, %v1450_v33 }
 0x21d   : > { %v1513_v17 = vpop.permute.xlu1 %1512  ;;  %v1577_v27 = vpop.permute.xlu0 %1576 }
 0x21e   : > { %v1529_v41 = vadd.f32 %v1513_v17, %v1451_v37  ;;  %v1600_v45 = vadd.f32 %v1577_v27, %v1522_v36 }
 0x221   : > { %v1579_v20 = vpop.permute.xlu1 %1578  ;;  %v1581_v35 = vpop.permute.xlu0 %1580 }
 0x222   : > { %v1601_v53 = vadd.f32 %v1579_v20, %v1523_v63  ;;  %v1602_v11 = vadd.f32 %v1581_v35, %v1524_v18 }
 0x225   : > { %v1583_v21 = vpop.permute.xlu1 %1582  ;;  %v1585_v15 = vpop.permute.xlu0 %1584 }
 0x226   : > { %v1603_v61 = vadd.f32 %v1583_v21, %v1525_v14  ;;  %v1604_v52 = vadd.f32 %v1585_v15, %v1526_v44 }
 0x229   : > { %v1587_v55 = vpop.permute.xlu1 %1586  ;;  %v1589_v57 = vpop.permute.xlu0 %1588 }
 0x22a   : > { %v1605_v0 = vadd.f32 %v1587_v55, %v1527_v46  ;;  %v1606_v40 = vadd.f32 %v1589_v57, %v1528_v30 }
 0x22d   : > { %v1591_v24 = vpop.permute.xlu1 %1590  ;;  %v1627_v1 = vpop.permute.xlu0 %1626 }
 0x22e   : > { %v3755_v6 = vadd.f32 %v1591_v24, %v1529_v41  ;;  %v1650_v56 = vadd.f32 %v1627_v1, %v1600_v45 }
 0x231   : > { %v1629_v25 = vpop.permute.xlu1 %1628  ;;  %v1631_v47 = vpop.permute.xlu0 %1630 }
 0x232   : > { %v1651_v36 = vadd.f32 %v1629_v25, %v1601_v53  ;;  %v1652_v16 = vadd.f32 %v1631_v47, %v1602_v11 }
 0x235   : > { %v1633_v31 = vpop.permute.xlu1 %1632  ;;  %v1635_v49 = vpop.permute.xlu0 %1634 }
 0x236   : > { %v1653_v22 = vadd.f32 %v1633_v31, %v1603_v61  ;;  %v1654_v39 = vadd.f32 %v1635_v49, %v1604_v52 }
 0x239   : > { %v1637_v2 = vpop.permute.xlu1 %1636  ;;  %v1639_v51 = vpop.permute.xlu0 %1638 }
 0x23a   : > { %v1655_v20 = vadd.f32 %v1637_v2, %v1605_v0  ;;  %v1656_v35 = vadd.f32 %v1639_v51, %v1606_v40 }
 0x23d   : > { %v1641_v43 = vpop.permute.xlu1 %1640  ;;  %v1705_v9 = vpop.permute.xlu0 %1704 }
 0x23e   : > { %v1728_v38 = vadd.f32 %v1705_v9, %v1650_v56  ;;  %v1657_v25 = vadd.f32 %v1641_v43, %v3755_v6 }
 0x241   : > { %v1707_v13 = vpop.permute.xlu1 %1706  ;;  %v1709_v8 = vpop.permute.xlu0 %1708 }
 0x242   : > { %v1729_v63 = vadd.f32 %v1707_v13, %v1651_v36  ;;  %v1730_v18 = vadd.f32 %v1709_v8, %v1652_v16 }
 0x245   : > { %v1711_v32 = vpop.permute.xlu1 %1710  ;;  %v1713_v3 = vpop.permute.xlu0 %1712 }
 0x246   : > { %v1731_v17 = vadd.f32 %v1711_v32, %v1653_v22  ;;  %v1732_v27 = vadd.f32 %v1713_v3, %v1654_v39 }
 0x249   : > { %v1715_v58 = vpop.permute.xlu1 %1714  ;;  %v1717_v19 = vpop.permute.xlu0 %1716 }
 0x24a   : > { %v1733_v55 = vadd.f32 %v1715_v58, %v1655_v20  ;;  %v1734_v57 = vadd.f32 %v1717_v19, %v1656_v35 }
 0x24d   : > { %v1719_v54 = vpop.permute.xlu1 %1718  ;;  %v1783_v7 = vpop.permute.xlu0 %1782 }
 0x24e   : > { %v1806_v23 = vadd.f32 %v1783_v7, %v1728_v38  ;;  %v1735_v51 = vadd.f32 %v1719_v54, %v1657_v25 }
 0x251   : > { %v1785_v12 = vpop.permute.xlu1 %1784  ;;  %v1787_v4 = vpop.permute.xlu0 %1786 }
 0x252   : > { %v1807_v28 = vadd.f32 %v1785_v12, %v1729_v63  ;;  %v1808_v46 = vadd.f32 %v1787_v4, %v1730_v18 }
 0x255   : > { %v1789_v10 = vpop.permute.xlu1 %1788  ;;  %v1791_v34 = vpop.permute.xlu0 %1790 }
 0x256   : > { %v1809_v21 = vadd.f32 %v1789_v10, %v1731_v17  ;;  %v1810_v15 = vadd.f32 %v1791_v34, %v1732_v27 }
 0x259   : > { %v1793_v5 = vpop.permute.xlu1 %1792  ;;  %v1795_v42 = vpop.permute.xlu0 %1794 }
 0x25a   : > { %v1811_v47 = vadd.f32 %v1793_v5, %v1733_v55  ;;  %v1812_v31 = vadd.f32 %v1795_v42, %v1734_v57 }
 0x25d   : > { %v1797_v50 = vpop.permute.xlu1 %1796  ;;  %v1861_v26 = vpop.permute.xlu0 %1860 }
 0x25e   : > { %v1884_v48 = vadd.f32 %v1861_v26, %v1806_v23  ;;  %v1813_v8 = vadd.f32 %v1797_v50, %v1735_v51 }
 0x261   : > { %v1863_v62 = vpop.permute.xlu1 %1862  ;;  %v1865_v29 = vpop.permute.xlu0 %1864 }
 0x262   : > { %v1885_v41 = vadd.f32 %v1863_v62, %v1807_v28  ;;  %v1886_v45 = vadd.f32 %v1865_v29, %v1808_v46 }
 0x265   : > { %v1867_v59 = vpop.permute.xlu1 %1866  ;;  %v1869_v33 = vpop.permute.xlu0 %1868 }
 0x266   : > { %v1887_v24 = vadd.f32 %v1867_v59, %v1809_v21  ;;  %v1888_v1 = vadd.f32 %v1869_v33, %v1810_v15 }
 0x269   : > { %v1871_v60 = vpop.permute.xlu1 %1870  ;;  %v1873_v37 = vpop.permute.xlu0 %1872 }
 0x26a   : > { %v1889_v9 = vadd.f32 %v1871_v60, %v1811_v47  ;;  %v1890_v13 = vadd.f32 %v1873_v37, %v1812_v31 }
 0x26d   : > { %v1875_v14 = vpop.permute.xlu1 %1874  ;;  %v1939_v44 = vpop.permute.xlu0 %1938 }
 0x26e   : > { %v1962_v30 = vadd.f32 %v1939_v44, %v1884_v48  ;;  %v1891_v58 = vadd.f32 %v1875_v14, %v1813_v8 }
 0x270   : > { %1971 = vst.msk [vmem:[%s3759_s16] sm:$0xff] %vm1970_vm7, %v1962_v30 }
 0x271   : > { %v1941_v53 = vpop.permute.xlu1 %1940  ;;  %v1943_v11 = vpop.permute.xlu0 %1942 }
 0x272   : > { %v1963_v61 = vadd.f32 %v1941_v53, %v1885_v41  ;;  %v1964_v52 = vadd.f32 %v1943_v11, %v1886_v45 }
 0x274   : > { %1972 = vst.msk [vmem:[%s3759_s16 + $0x8] sm:$0xff] %vm1970_vm7, %v1963_v61  ;;  %1973 = vst.msk [vmem:[%s3759_s16 + $0x10] sm:$0xff] %vm1970_vm7, %v1964_v52 }
 0x275   : > { %v1945_v0 = vpop.permute.xlu1 %1944  ;;  %v1947_v40 = vpop.permute.xlu0 %1946 }
 0x276   : > { %v1965_v49 = vadd.f32 %v1945_v0, %v1887_v24  ;;  %v1966_v2 = vadd.f32 %v1947_v40, %v1888_v1 }
 0x278   : > { %1974 = vst.msk [vmem:[%s3759_s16 + $0x18] sm:$0xff] %vm1970_vm7, %v1965_v49  ;;  %1975 = vst.msk [vmem:[%s3759_s16 + $0x20] sm:$0xff] %vm1970_vm7, %v1966_v2 }
 0x279   : > { %v1949_v6 = vpop.permute.xlu1 %1948  ;;  %v1951_v43 = vpop.permute.xlu0 %1950 }
 0x27a   : > { %v1967_v32 = vadd.f32 %v1949_v6, %v1889_v9  ;;  %v1968_v3 = vadd.f32 %v1951_v43, %v1890_v13 }
 0x27c   : > { %1976 = vst.msk [vmem:[%s3759_s16 + $0x28] sm:$0xff] %vm1970_vm7, %v1967_v32  ;;  %1977 = vst.msk [vmem:[%s3759_s16 + $0x30] sm:$0xff] %vm1970_vm7, %v1968_v3 }
 0x27d   : > { %v1953_v19 = vpop.permute.xlu1 %1952 }
 0x27e   : > { %v1969_v54 = vadd.f32 %v1953_v19, %v1891_v58 }
 0x280   : > { %1978 = vst.msk [vmem:[%s3759_s16 + $0x38] sm:$0xff] %vm1970_vm7, %v1969_v54 }
 0x281   : > { %2268 = shalt.err (!%p2265_p0)
}
 0x282   : > { %s2269_s4 = scalar_lea.hbm %s3781_s23, 1024  ;;  %s2273_s7 = scalar_lea.hbm %s3831_s2, 2048 }
 0x283   : > { %p2270_p8 = scmp.ne.s32.totalorder %s3781_s23, %s2269_s4  ;;  %p2274_p1 = scmp.lt.u32.totalorder %s3781_s23, %s3831_s2 }
 0x284   : > { %p2275_p2 = scmp.lt.u32.totalorder %s2273_s7, %s2269_s4  ;;  %p2277_p12 = scmp.lt.u32.totalorder %s2269_s4, %s3781_s23 }
 0x285   : > { %p2271_p9 = pnand %p2270_p8, %p3972_p13 }
 0x286   : > { %p2276_p11 = por %p2275_p2, %p2274_p1 }
 0x287   : > { %p2272_p10 = pneg %p2271_p9 }
 0x288   : > { %p2278_p7 = por %p2277_p12, %p2276_p11 }
 0x28a   : > { %p2279_p3 = pnand %p2278_p7, %p2272_p10 }
 0x28c   : > { %2282 = shalt.err (!%p2279_p3)
}
 0x28d   : > { %s2338_s8 = smov 128   ;;  %s2339_s14 = smov 8  }
 0x28e   : > { %2131 = dma.vmem_to_hbm [thread:$0]  (%p3972_p13), %s3783_s17, 1024, %s3781_s23, %s1980_s13, %s2338_s8, %s2338_s8, %s2339_s14  }
 0x28f PF: > { %s2009_s16 = sand.u32 1, %s2313_s9   ;;  %p3973_p6 = scmp.ne.s32.totalorder %s3844_s22, 0 }
 0x290   : > { %p3974_p4 = scmp.ge.s32.totalorder %s2325_s12, 2  ;;  %s2010_s3 = scalar_lea.sflag [#allocation5], %s2009_s16 }
 0x292   : > { %p2142_p5 = pnand %p3974_p4, %p3973_p6 }
 0x294   : > { %2308 = dma.done.wait (!%p2142_p5), %s2010_s3, 1024  }
 0x295   : > { %2310 = vsyncadd (!%p2142_p5), %s2010_s3, 4294966272  ;;  %p16_p0 = scmp.ge.s32.totalorder %s2380_s15, 4   ;;  %s3975_s9 = smov %s2317_s10 }
 0x296   : > { %s3976_s10 = smov %s2321_s11  ;;  %s3977_s11 = smov %s2392_s18 }
 0x297   : > { %s3978_s12 = smov %s2380_s15  ;;  %18 = sbr.rel (!%p16_p0) target bundleno = 6 (0x6), region = 78 }
 0x29e   :  { %2015 = vsyncpa [#allocation4], 1 }
 0x29f   :  { %2017 = vsyncpa [#allocation4 + $0x1], 1 }
 0x2a0   :  { %2018 = vsyncpa [#allocation5], 1 }
 0x2a1   :  { %2020 = vsyncpa [#allocation5 + $0x1], 1 }
 0x2a2   :  { %2021 = vsyncpa [#allocation6], 1 }
 0x2a3   :  { %2023 = vsyncpa [#allocation6 + $0x1], 1 }

</bundles_post_ra>
